<compile_context>
chip_gen: v7x
topology: tpu7x:2x2x1
jax: 0.10.0
libtpu: 0.0.40
codegen_flags: <defaults>
</compile_context>

<pallas_src>
import functools

import jax
import jax.numpy as jnp
from jax import lax
from jax.experimental import pallas as pl
from jax.experimental.pallas import tpu as pltpu


def _round_up(x, m):
    return (x + m - 1) // m * m


def _pick_bt(B):
    # Batch elements folded into lanes per grid step.  Keep >= 2 grid steps when
    # possible so both v7x TensorCores get work via the "parallel" grid axis.
    for bt in (8, 4, 2):
        if B % bt == 0 and B // bt >= 2:
            return bt
    return 1


def _build_fused_kernel(n_conv, cins, couts, ks, Fp, G, pad0, N, Lz, p, Cact):
    def kernel(*refs):
        # refs = (x, w_0, b_0, ..., w_{n-1}, b_{n-1}, mask, sel, out, act, stk)
        x_ref = refs[0]
        mask_ref = refs[1 + 2 * n_conv]
        sel_ref = refs[2 + 2 * n_conv]
        o_ref = refs[3 + 2 * n_conv]
        act_ref = refs[4 + 2 * n_conv]
        stk_ref = refs[5 + 2 * n_conv]

        if n_conv > 1:
            # Segment-0 causal-padding prefix (lane-aligned, written once).  Segment
            # b>=1 prefixes and per-row feature gaps are re-zeroed by the mask below.
            act_ref[:, 0:pad0] = jnp.zeros((Cact, pad0), jnp.bfloat16)

        acc = None
        for li in range(n_conv):
            w_ref = refs[1 + 2 * li]          # [Cout, k*k*Cin]  bf16 (VMEM resident)
            b_ref = refs[2 + 2 * li]          # [Cout, 1]        f32
            k, cin, cout = ks[li], cins[li], couts[li]

            # Layer input in the flat causal layout [Cin, Bt*Lseg] (bf16, VMEM).
            src = x_ref[0] if li == 0 else act_ref[0:cin, :]

            # im2col: every causal tap (dh, dw) is a constant lane shift of `src`;
            # stack the k*k shifted views along the contraction axis so the whole
            # layer is ONE MXU matmul (K = k*k*Cin) instead of k*k tiny dots.
            t = 0
            for dh in range(k):
                for dw in range(k):
                    d = (k - 1 - dh) * Fp + (k - 1 - dw)
                    stk_ref[t * cin:(t + 1) * cin, :] = src[:, pad0 - d:pad0 - d + N]
                    t += 1

            acc = jnp.dot(w_ref[...], stk_ref[0:k * k * cin, :],
                          preferred_element_type=jnp.float32)       # [Cout, N] f32
            acc = acc + b_ref[...]                                   # lane-broadcast bias

            if li < n_conv - 1:
                # Re-zero causal-padding columns once per layer (row gaps + segment
                # prefixes) while writing the next layer's input back to VMEM (bf16).
                act_ref[0:cout, pad0:] = (acc * mask_ref[...]).astype(jnp.bfloat16)

        # MaxPool2d(p, stride=p): p*p lane-shifted maxima, then an exact 0/1 selection
        # matmul extracting the stride-p anchors into a lane-dense output tile.
        z = acc[:, 0:Lz]
        for i in range(p):
            for j in range(p):
                if i == 0 and j == 0:
                    continue
                d2 = i * Fp + j
                z = jnp.maximum(z, acc[:, d2:d2 + Lz])
        pooled = jnp.dot(z, sel_ref[...], preferred_element_type=jnp.float32)
        o_ref[0] = pooled.astype(o_ref.dtype)                        # [Cout, Nout_pad]

    return kernel


@functools.partial(jax.jit, static_argnums=(4,))
def causal_vgg_block_forward(x, lengths, weights, biases, pooling_kernel_size):
    B, cin0, M, F = x.shape
    p = int(pooling_kernel_size)
    n_conv = len(weights)
    couts = tuple(int(w.shape[0]) for w in weights)
    cins = (cin0,) + couts[:-1]
    ks = tuple(int(w.shape[-1]) for w in weights)
    K = max(ks)
    G = K - 1                       # feature-axis causal padding = physical zero lanes/row
    Fp = F + G                      # padded row stride -> no per-tap wrap masks needed
    Mo, Fo = M // p, F // p

    # Flat per-batch-segment layout: [pad0 zeros | M rows of (G zeros + F data)].
    # pad0 >= max tap shift and rounded to 128 for lane-aligned per-layer writebacks.
    pad0 = _round_up(G * Fp + G, 128)
    Lseg = pad0 + M * Fp

    Bt = _pick_bt(B)                # batch elements folded into lanes per grid step
    nb = B // Bt
    BtL = Bt * Lseg
    N = BtL - pad0                  # flat conv-output span per grid step
    Nout = Bt * Mo * Fo
    Nout_pad = _round_up(Nout, 128)                     # lane-dense (unmasked) output
    Lz = (Bt - 1) * Lseg + (Mo - 1) * p * Fp + G + (Fo - 1) * p + 1

    Cact = max([8] + [int(c) for c in couts[:-1]])      # rows of the activation scratch
    KKC = _round_up(max(k * k * c for k, c in zip(ks, cins)), 8)   # im2col stack rows

    # ---- wrapper-side layout plumbing (cheap one-off reshapes/pads) ----
    # x: [B,C,M,F] -> flat causal layout [nb, C, Bt*Lseg], bf16 (MXU-native input).
    xl = jnp.pad(x, ((0, 0), (0, 0), (0, 0), (G, 0)))                 # feature gap zeros
    xl = xl.reshape(B, cin0, M * Fp)
    xl = jnp.pad(xl, ((0, 0), (0, 0), (pad0, 0)))                     # causal prefix zeros
    xl = xl.reshape(nb, Bt, cin0, Lseg).transpose(0, 2, 1, 3).reshape(nb, cin0, BtL)
    xl = xl.astype(jnp.bfloat16)

    # Conv params: w [Cout,Cin,k,k] -> [Cout, k*k*Cin] bf16 (tap-major, matching the
    # in-kernel im2col stack order); b -> [Cout,1] f32 lane-broadcast bias.
    flat_params, param_specs = [], []
    for w, b in zip(weights, biases):
        cout, cin, k, _ = w.shape
        wf = jnp.transpose(w, (0, 2, 3, 1)).reshape(cout, k * k * cin).astype(jnp.bfloat16)
        flat_params.append(wf)
        flat_params.append(b.reshape(cout, 1).astype(jnp.float32))
        param_specs.append(pl.BlockSpec((cout, k * k * cin), lambda i: (0, 0)))
        param_specs.append(pl.BlockSpec((cout, 1), lambda i: (0, 0)))

    # 0/1 mask of valid data columns in the flat conv-output span (zeros at per-row
    # gaps and at segment b>=1 causal prefixes) -> one vmul per layer writeback.
    q = jnp.arange(N, dtype=jnp.int32) + pad0
    r = q % Lseg
    valid = (r >= pad0) & (((r - pad0) % Fp) >= G)
    mask = valid.astype(jnp.float32).reshape(1, N)

    # 0/1 selection matrix extracting the stride-p pool anchors into the lane-dense
    # output layout o = b_local*Mo*Fo + mo*Fo + fo (padded up to a multiple of 128).
    o_idx = jnp.arange(Nout, dtype=jnp.int32)
    b_i = o_idx // (Mo * Fo)
    rem = o_idx % (Mo * Fo)
    anchors = b_i * Lseg + (rem // Fo) * p * Fp + G + (rem % Fo) * p
    sel = (jnp.arange(Lz, dtype=jnp.int32)[:, None] == anchors[None, :]).astype(jnp.float32)
    if Nout_pad > Nout:
        sel = jnp.pad(sel, ((0, 0), (0, Nout_pad - Nout)))

    kernel = _build_fused_kernel(n_conv, cins, couts, ks, Fp, G, pad0, N, Lz, p, Cact)

    out_flat = pl.pallas_call(
        kernel,
        out_shape=jax.ShapeDtypeStruct((nb, couts[-1], Nout_pad), jnp.float32),
        grid_spec=pltpu.PrefetchScalarGridSpec(
            num_scalar_prefetch=0,
            grid=(nb,),
            in_specs=[pl.BlockSpec((1, cin0, BtL), lambda i: (i, 0, 0))]
                    + param_specs
                    + [pl.BlockSpec((1, N), lambda i: (0, 0)),
                       pl.BlockSpec((Lz, Nout_pad), lambda i: (0, 0))],
            out_specs=pl.BlockSpec((1, couts[-1], Nout_pad), lambda i: (i, 0, 0)),
            scratch_shapes=[pltpu.VMEM((Cact, BtL), jnp.bfloat16),   # inter-layer acts
                            pltpu.VMEM((KKC, N), jnp.bfloat16)],     # im2col staging
        ),
        compiler_params=pltpu.CompilerParams(dimension_semantics=("parallel",)),
    )(xl, *flat_params, mask, sel)

    out = out_flat[:, :, :Nout].reshape(nb, couts[-1], Bt, Mo, Fo)
    out = out.transpose(0, 2, 1, 3, 4).reshape(B, couts[-1], Mo, Fo)
    lengths = lengths // p          # trivial integer op, kept as plain JAX
    return out, lengths


# ---------------------------------------------------------------------------
# Pure-JAX reference (for correctness check only).
# ---------------------------------------------------------------------------
def reference_forward(x, lengths, weights, biases, p):
    for w, b in zip(weights, biases):
        k = w.shape[-1]
        xp = jnp.pad(x, ((0, 0), (0, 0), (k - 1, 0), (k - 1, 0)))
        x = lax.conv_general_dilated(
            xp, w, window_strides=(1, 1), padding="VALID",
            dimension_numbers=("NCHW", "OIHW", "NCHW"),
        ) + b[None, :, None, None]
    x = lax.reduce_window(
        x, -jnp.inf, lax.max,
        window_dimensions=(1, 1, p, p), window_strides=(1, 1, p, p),
        padding="VALID",
    )
    return x, lengths // p


if __name__ == "__main__":
    # Module config: n_conv=2, in_channels=4, out_channels=[8, 8],
    #                kernel_sizes=[3, 3], pooling_kernel_size=2
    n_conv = 2
    in_channels = 4
    out_channels = [8, 8]
    kernel_sizes = [3, 3]
    pooling_kernel_size = 2

    B, M, F = 4, 16, 16     # B=4 -> Bt=2 batch elements per grid step, 2 grid steps

    key = jax.random.PRNGKey(0)
    keys = jax.random.split(key, 2 * n_conv + 2)

    # Deterministic parameter init (PyTorch-like uniform(+-1/sqrt(fan_in))).
    weights, biases = [], []
    cin = in_channels
    for i in range(n_conv):
        k = kernel_sizes[i]
        cout = out_channels[i]
        bound = float(1.0 / jnp.sqrt(cin * k * k))
        w = jax.random.uniform(keys[2 * i], (cout, cin, k, k),
                               jnp.float32, -bound, bound)
        b = jax.random.uniform(keys[2 * i + 1], (cout,),
                               jnp.float32, -bound, bound)
        weights.append(w)
        biases.append(b)
        cin = cout

    x = jax.random.normal(keys[-2], (B, in_channels, M, F), jnp.float32)
    lengths = jnp.array([16, 11, 9, 16], dtype=jnp.int32)

    out, out_lengths = causal_vgg_block_forward(
        x, lengths, tuple(weights), tuple(biases), pooling_kernel_size)
    out = jax.block_until_ready(out)
    out_lengths = jax.block_until_ready(out_lengths)

    ref_out, ref_lengths = reference_forward(
        x, lengths, weights, biases, pooling_kernel_size)

    assert out.shape == (B, out_channels[-1], M // pooling_kernel_size,
                         F // pooling_kernel_size), out.shape
    # Tolerance covers bf16 MXU inputs (f32 accumulation); structural bugs (wrong
    # causal padding, wrong pool anchors, batch mixing) would be O(0.1..1) off.
    max_err = float(jnp.max(jnp.abs(out - ref_out)))
    assert jnp.allclose(out, ref_out, rtol=3e-2, atol=3e-2), max_err
    assert jnp.array_equal(out_lengths, ref_lengths), "lengths mismatch"

    print("KERNEL_OK")
</pallas_src>

<mosaic_0001>
module attributes {stable_mosaic.version = 11 : i64} {
  func.func @kernel(%arg0: i32, %arg1: memref<1x4x832xbf16, #tpu.memory_space<vmem>>, %arg2: memref<8x36xbf16, #tpu.memory_space<vmem>>, %arg3: memref<8x1xf32, #tpu.memory_space<vmem>>, %arg4: memref<8x72xbf16, #tpu.memory_space<vmem>>, %arg5: memref<8x1xf32, #tpu.memory_space<vmem>>, %arg6: memref<1x704xf32, #tpu.memory_space<vmem>>, %arg7: memref<685x128xf32, #tpu.memory_space<vmem>>, %arg8: memref<1x8x128xf32, #tpu.memory_space<vmem>>, %arg9: memref<8x832xbf16, #tpu.memory_space<vmem>>, %arg10: memref<72x704xbf16, #tpu.memory_space<vmem>>) attributes {dimension_semantics = [#tpu.dimension_semantics<parallel>], iteration_bounds = array<i64: 2>, scalar_prefetch = 0 : i64, scratch_operands = 2 : i64, tpu.core_type = #tpu.core_type<tc>, window_params = [{transform_indices = @transform_0, window_bounds = array<i64: 1, 4, 832>}, {pipeline_mode = #tpu.pipeline_mode<synchronous>, transform_indices = @transform_1, window_bounds = array<i64: 8, 36>}, {pipeline_mode = #tpu.pipeline_mode<synchronous>, transform_indices = @transform_2, window_bounds = array<i64: 8, 1>}, {pipeline_mode = #tpu.pipeline_mode<synchronous>, transform_indices = @transform_3, window_bounds = array<i64: 8, 72>}, {pipeline_mode = #tpu.pipeline_mode<synchronous>, transform_indices = @transform_4, window_bounds = array<i64: 8, 1>}, {pipeline_mode = #tpu.pipeline_mode<synchronous>, transform_indices = @transform_5, window_bounds = array<i64: 1, 704>}, {pipeline_mode = #tpu.pipeline_mode<synchronous>, transform_indices = @transform_6, window_bounds = array<i64: 685, 128>}, {transform_indices = @transform_7, window_bounds = array<i64: 1, 8, 128>}]} {
    %cst = arith.constant 0.000000e+00 : bf16
    %0 = vector.broadcast %cst : bf16 to vector<8x128xbf16>
    %c0 = arith.constant 0 : index
    %c0_0 = arith.constant 0 : index
    %1 = vector.load %arg9[%c0, %c0_0] : memref<8x832xbf16, #tpu.memory_space<vmem>>, vector<8x128xbf16>
    tpu.vector_store %arg9[%c0, %c0_0], %0 {strides = array<i32>} : memref<8x832xbf16, #tpu.memory_space<vmem>>, vector<8x128xbf16>,
    %c0_1 = arith.constant 0 : index
    %c0_2 = arith.constant 0 : index
    %c0_3 = arith.constant 0 : index
    %2 = vector.load %arg1[%c0_1, %c0_2, %c0_3] : memref<1x4x832xbf16, #tpu.memory_space<vmem>>, vector<1x4x832xbf16>
    %3 = vector.shape_cast %2 : vector<1x4x832xbf16> to vector<4x832xbf16>
    %4 = vector.extract_strided_slice %3 {offsets = [0, 90], sizes = [4, 704], strides = [1, 1]} : vector<4x832xbf16> to vector<4x704xbf16>
    %c0_4 = arith.constant 0 : index
    %c0_5 = arith.constant 0 : index
    %5 = vector.load %arg10[%c0_4, %c0_5] : memref<72x704xbf16, #tpu.memory_space<vmem>>, vector<4x704xbf16>
    tpu.vector_store %arg10[%c0_4, %c0_5], %4 {strides = array<i32>} : memref<72x704xbf16, #tpu.memory_space<vmem>>, vector<4x704xbf16>,
    %6 = vector.extract_strided_slice %3 {offsets = [0, 91], sizes = [4, 704], strides = [1, 1]} : vector<4x832xbf16> to vector<4x704xbf16>
    %c4 = arith.constant 4 : index
    %c0_6 = arith.constant 0 : index
    %7 = vector.load %arg10[%c4, %c0_6] : memref<72x704xbf16, #tpu.memory_space<vmem>>, vector<4x704xbf16>
    tpu.vector_store %arg10[%c4, %c0_6], %6 {strides = array<i32>} : memref<72x704xbf16, #tpu.memory_space<vmem>>, vector<4x704xbf16>,
    %8 = vector.extract_strided_slice %3 {offsets = [0, 92], sizes = [4, 704], strides = [1, 1]} : vector<4x832xbf16> to vector<4x704xbf16>
    %c8 = arith.constant 8 : index
    %c0_7 = arith.constant 0 : index
    %9 = vector.load %arg10[%c8, %c0_7] : memref<72x704xbf16, #tpu.memory_space<vmem>>, vector<4x704xbf16>
    tpu.vector_store %arg10[%c8, %c0_7], %8 {strides = array<i32>} : memref<72x704xbf16, #tpu.memory_space<vmem>>, vector<4x704xbf16>,
    %10 = vector.extract_strided_slice %3 {offsets = [0, 108], sizes = [4, 704], strides = [1, 1]} : vector<4x832xbf16> to vector<4x704xbf16>
    %c12 = arith.constant 12 : index
    %c0_8 = arith.constant 0 : index
    %11 = vector.load %arg10[%c12, %c0_8] : memref<72x704xbf16, #tpu.memory_space<vmem>>, vector<4x704xbf16>
    tpu.vector_store %arg10[%c12, %c0_8], %10 {strides = array<i32>} : memref<72x704xbf16, #tpu.memory_space<vmem>>, vector<4x704xbf16>,
    %12 = vector.extract_strided_slice %3 {offsets = [0, 109], sizes = [4, 704], strides = [1, 1]} : vector<4x832xbf16> to vector<4x704xbf16>
    %c16 = arith.constant 16 : index
    %c0_9 = arith.constant 0 : index
    %13 = vector.load %arg10[%c16, %c0_9] : memref<72x704xbf16, #tpu.memory_space<vmem>>, vector<4x704xbf16>
    tpu.vector_store %arg10[%c16, %c0_9], %12 {strides = array<i32>} : memref<72x704xbf16, #tpu.memory_space<vmem>>, vector<4x704xbf16>,
    %14 = vector.extract_strided_slice %3 {offsets = [0, 110], sizes = [4, 704], strides = [1, 1]} : vector<4x832xbf16> to vector<4x704xbf16>
    %c20 = arith.constant 20 : index
    %c0_10 = arith.constant 0 : index
    %15 = vector.load %arg10[%c20, %c0_10] : memref<72x704xbf16, #tpu.memory_space<vmem>>, vector<4x704xbf16>
    tpu.vector_store %arg10[%c20, %c0_10], %14 {strides = array<i32>} : memref<72x704xbf16, #tpu.memory_space<vmem>>, vector<4x704xbf16>,
    %16 = vector.extract_strided_slice %3 {offsets = [0, 126], sizes = [4, 704], strides = [1, 1]} : vector<4x832xbf16> to vector<4x704xbf16>
    %c24 = arith.constant 24 : index
    %c0_11 = arith.constant 0 : index
    %17 = vector.load %arg10[%c24, %c0_11] : memref<72x704xbf16, #tpu.memory_space<vmem>>, vector<4x704xbf16>
    tpu.vector_store %arg10[%c24, %c0_11], %16 {strides = array<i32>} : memref<72x704xbf16, #tpu.memory_space<vmem>>, vector<4x704xbf16>,
    %18 = vector.extract_strided_slice %3 {offsets = [0, 127], sizes = [4, 704], strides = [1, 1]} : vector<4x832xbf16> to vector<4x704xbf16>
    %c28 = arith.constant 28 : index
    %c0_12 = arith.constant 0 : index
    %19 = vector.load %arg10[%c28, %c0_12] : memref<72x704xbf16, #tpu.memory_space<vmem>>, vector<4x704xbf16>
    tpu.vector_store %arg10[%c28, %c0_12], %18 {strides = array<i32>} : memref<72x704xbf16, #tpu.memory_space<vmem>>, vector<4x704xbf16>,
    %20 = vector.extract_strided_slice %3 {offsets = [0, 128], sizes = [4, 704], strides = [1, 1]} : vector<4x832xbf16> to vector<4x704xbf16>
    %c32 = arith.constant 32 : index
    %c0_13 = arith.constant 0 : index
    %21 = vector.load %arg10[%c32, %c0_13] : memref<72x704xbf16, #tpu.memory_space<vmem>>, vector<4x704xbf16>
    tpu.vector_store %arg10[%c32, %c0_13], %20 {strides = array<i32>} : memref<72x704xbf16, #tpu.memory_space<vmem>>, vector<4x704xbf16>,
    %c0_14 = arith.constant 0 : index
    %c0_15 = arith.constant 0 : index
    %22 = vector.load %arg2[%c0_14, %c0_15] : memref<8x36xbf16, #tpu.memory_space<vmem>>, vector<8x36xbf16>
    %c0_16 = arith.constant 0 : index
    %c0_17 = arith.constant 0 : index
    %23 = vector.load %arg10[%c0_16, %c0_17] : memref<72x704xbf16, #tpu.memory_space<vmem>>, vector<36x704xbf16>
    %cst_18 = arith.constant dense<0.000000e+00> : vector<8x704xf32>
    %24 = tpu.matmul %22, %23, %cst_18 {dimension_numbers = #tpu.dot_dimension_numbers<[1], [0], [0], [1], [0, 0, 1, 1], [], []>} : vector<8x36xbf16>, vector<36x704xbf16>, vector<8x704xf32> -> vector<8x704xf32>
    %c0_19 = arith.constant 0 : index
    %c0_20 = arith.constant 0 : index
    %25 = vector.load %arg3[%c0_19, %c0_20] : memref<8x1xf32, #tpu.memory_space<vmem>>, vector<8x1xf32>
    %26 = vector.broadcast %25 : vector<8x1xf32> to vector<8x704xf32>
    %27 = arith.addf %24, %26 : vector<8x704xf32>
    %c0_21 = arith.constant 0 : index
    %c0_22 = arith.constant 0 : index
    %28 = vector.load %arg6[%c0_21, %c0_22] : memref<1x704xf32, #tpu.memory_space<vmem>>, vector<1x704xf32>
    %29 = vector.broadcast %28 : vector<1x704xf32> to vector<8x704xf32>
    %30 = arith.mulf %27, %29 : vector<8x704xf32>
    %31 = arith.truncf %30 : vector<8x704xf32> to vector<8x704xbf16>
    %c0_23 = arith.constant 0 : index
    %c128 = arith.constant 128 : index
    %32 = vector.load %arg9[%c0_23, %c128] : memref<8x832xbf16, #tpu.memory_space<vmem>>, vector<8x704xbf16>
    tpu.vector_store %arg9[%c0_23, %c128], %31 {strides = array<i32>} : memref<8x832xbf16, #tpu.memory_space<vmem>>, vector<8x704xbf16>,
    %c0_24 = arith.constant 0 : index
    %c0_25 = arith.constant 0 : index
    %33 = vector.load %arg9[%c0_24, %c0_25] : memref<8x832xbf16, #tpu.memory_space<vmem>>, vector<8x832xbf16>
    %34 = vector.extract_strided_slice %33 {offsets = [0, 90], sizes = [8, 704], strides = [1, 1]} : vector<8x832xbf16> to vector<8x704xbf16>
    %c0_26 = arith.constant 0 : index
    %c0_27 = arith.constant 0 : index
    %35 = vector.load %arg10[%c0_26, %c0_27] : memref<72x704xbf16, #tpu.memory_space<vmem>>, vector<8x704xbf16>
    tpu.vector_store %arg10[%c0_26, %c0_27], %34 {strides = array<i32>} : memref<72x704xbf16, #tpu.memory_space<vmem>>, vector<8x704xbf16>,
    %36 = vector.extract_strided_slice %33 {offsets = [0, 91], sizes = [8, 704], strides = [1, 1]} : vector<8x832xbf16> to vector<8x704xbf16>
    %c8_28 = arith.constant 8 : index
    %c0_29 = arith.constant 0 : index
    %37 = vector.load %arg10[%c8_28, %c0_29] : memref<72x704xbf16, #tpu.memory_space<vmem>>, vector<8x704xbf16>
    tpu.vector_store %arg10[%c8_28, %c0_29], %36 {strides = array<i32>} : memref<72x704xbf16, #tpu.memory_space<vmem>>, vector<8x704xbf16>,
    %38 = vector.extract_strided_slice %33 {offsets = [0, 92], sizes = [8, 704], strides = [1, 1]} : vector<8x832xbf16> to vector<8x704xbf16>
    %c16_30 = arith.constant 16 : index
    %c0_31 = arith.constant 0 : index
    %39 = vector.load %arg10[%c16_30, %c0_31] : memref<72x704xbf16, #tpu.memory_space<vmem>>, vector<8x704xbf16>
    tpu.vector_store %arg10[%c16_30, %c0_31], %38 {strides = array<i32>} : memref<72x704xbf16, #tpu.memory_space<vmem>>, vector<8x704xbf16>,
    %40 = vector.extract_strided_slice %33 {offsets = [0, 108], sizes = [8, 704], strides = [1, 1]} : vector<8x832xbf16> to vector<8x704xbf16>
    %c24_32 = arith.constant 24 : index
    %c0_33 = arith.constant 0 : index
    %41 = vector.load %arg10[%c24_32, %c0_33] : memref<72x704xbf16, #tpu.memory_space<vmem>>, vector<8x704xbf16>
    tpu.vector_store %arg10[%c24_32, %c0_33], %40 {strides = array<i32>} : memref<72x704xbf16, #tpu.memory_space<vmem>>, vector<8x704xbf16>,
    %42 = vector.extract_strided_slice %33 {offsets = [0, 109], sizes = [8, 704], strides = [1, 1]} : vector<8x832xbf16> to vector<8x704xbf16>
    %c32_34 = arith.constant 32 : index
    %c0_35 = arith.constant 0 : index
    %43 = vector.load %arg10[%c32_34, %c0_35] : memref<72x704xbf16, #tpu.memory_space<vmem>>, vector<8x704xbf16>
    tpu.vector_store %arg10[%c32_34, %c0_35], %42 {strides = array<i32>} : memref<72x704xbf16, #tpu.memory_space<vmem>>, vector<8x704xbf16>,
    %44 = vector.extract_strided_slice %33 {offsets = [0, 110], sizes = [8, 704], strides = [1, 1]} : vector<8x832xbf16> to vector<8x704xbf16>
    %c40 = arith.constant 40 : index
    %c0_36 = arith.constant 0 : index
    %45 = vector.load %arg10[%c40, %c0_36] : memref<72x704xbf16, #tpu.memory_space<vmem>>, vector<8x704xbf16>
    tpu.vector_store %arg10[%c40, %c0_36], %44 {strides = array<i32>} : memref<72x704xbf16, #tpu.memory_space<vmem>>, vector<8x704xbf16>,
    %46 = vector.extract_strided_slice %33 {offsets = [0, 126], sizes = [8, 704], strides = [1, 1]} : vector<8x832xbf16> to vector<8x704xbf16>
    %c48 = arith.constant 48 : index
    %c0_37 = arith.constant 0 : index
    %47 = vector.load %arg10[%c48, %c0_37] : memref<72x704xbf16, #tpu.memory_space<vmem>>, vector<8x704xbf16>
    tpu.vector_store %arg10[%c48, %c0_37], %46 {strides = array<i32>} : memref<72x704xbf16, #tpu.memory_space<vmem>>, vector<8x704xbf16>,
    %48 = vector.extract_strided_slice %33 {offsets = [0, 127], sizes = [8, 704], strides = [1, 1]} : vector<8x832xbf16> to vector<8x704xbf16>
    %c56 = arith.constant 56 : index
    %c0_38 = arith.constant 0 : index
    %49 = vector.load %arg10[%c56, %c0_38] : memref<72x704xbf16, #tpu.memory_space<vmem>>, vector<8x704xbf16>
    tpu.vector_store %arg10[%c56, %c0_38], %48 {strides = array<i32>} : memref<72x704xbf16, #tpu.memory_space<vmem>>, vector<8x704xbf16>,
    %50 = vector.extract_strided_slice %33 {offsets = [0, 128], sizes = [8, 704], strides = [1, 1]} : vector<8x832xbf16> to vector<8x704xbf16>
    %c64 = arith.constant 64 : index
    %c0_39 = arith.constant 0 : index
    %51 = vector.load %arg10[%c64, %c0_39] : memref<72x704xbf16, #tpu.memory_space<vmem>>, vector<8x704xbf16>
    tpu.vector_store %arg10[%c64, %c0_39], %50 {strides = array<i32>} : memref<72x704xbf16, #tpu.memory_space<vmem>>, vector<8x704xbf16>,
    %c0_40 = arith.constant 0 : index
    %c0_41 = arith.constant 0 : index
    %52 = vector.load %arg4[%c0_40, %c0_41] : memref<8x72xbf16, #tpu.memory_space<vmem>>, vector<8x72xbf16>
    %c0_42 = arith.constant 0 : index
    %c0_43 = arith.constant 0 : index
    %53 = vector.load %arg10[%c0_42, %c0_43] : memref<72x704xbf16, #tpu.memory_space<vmem>>, vector<72x704xbf16>
    %cst_44 = arith.constant dense<0.000000e+00> : vector<8x704xf32>
    %54 = tpu.matmul %52, %53, %cst_44 {dimension_numbers = #tpu.dot_dimension_numbers<[1], [0], [0], [1], [0, 0, 1, 1], [], []>} : vector<8x72xbf16>, vector<72x704xbf16>, vector<8x704xf32> -> vector<8x704xf32>
    %c0_45 = arith.constant 0 : index
    %c0_46 = arith.constant 0 : index
    %55 = vector.load %arg5[%c0_45, %c0_46] : memref<8x1xf32, #tpu.memory_space<vmem>>, vector<8x1xf32>
    %56 = vector.broadcast %55 : vector<8x1xf32> to vector<8x704xf32>
    %57 = arith.addf %54, %56 : vector<8x704xf32>
    %58 = vector.extract_strided_slice %57 {offsets = [0, 0], sizes = [8, 685], strides = [1, 1]} : vector<8x704xf32> to vector<8x685xf32>
    %59 = vector.extract_strided_slice %57 {offsets = [0, 1], sizes = [8, 685], strides = [1, 1]} : vector<8x704xf32> to vector<8x685xf32>
    %60 = arith.maximumf %58, %59 : vector<8x685xf32>
    %61 = vector.extract_strided_slice %57 {offsets = [0, 18], sizes = [8, 685], strides = [1, 1]} : vector<8x704xf32> to vector<8x685xf32>
    %62 = arith.maximumf %60, %61 : vector<8x685xf32>
    %63 = vector.extract_strided_slice %57 {offsets = [0, 19], sizes = [8, 685], strides = [1, 1]} : vector<8x704xf32> to vector<8x685xf32>
    %64 = arith.maximumf %62, %63 : vector<8x685xf32>
    %c0_47 = arith.constant 0 : index
    %c0_48 = arith.constant 0 : index
    %65 = vector.load %arg7[%c0_47, %c0_48] : memref<685x128xf32, #tpu.memory_space<vmem>>, vector<685x128xf32>
    %cst_49 = arith.constant dense<0.000000e+00> : vector<8x128xf32>
    %66 = tpu.matmul %64, %65, %cst_49 {dimension_numbers = #tpu.dot_dimension_numbers<[1], [0], [0], [1], [0, 0, 1, 1], [], []>} : vector<8x685xf32>, vector<685x128xf32>, vector<8x128xf32> -> vector<8x128xf32>
    %c0_50 = arith.constant 0 : index
    %c0_51 = arith.constant 0 : index
    %c0_52 = arith.constant 0 : index
    %67 = vector.load %arg8[%c0_50, %c0_51, %c0_52] : memref<1x8x128xf32, #tpu.memory_space<vmem>>, vector<1x8x128xf32>
    %68 = vector.shape_cast %67 : vector<1x8x128xf32> to vector<8x128xf32>
    %69 = vector.shape_cast %66 : vector<8x128xf32> to vector<1x8x128xf32>
    tpu.vector_store %arg8[%c0_50, %c0_51, %c0_52], %69 {strides = array<i32>} : memref<1x8x128xf32, #tpu.memory_space<vmem>>, vector<1x8x128xf32>,
    return
  }
  func.func @transform_0(%arg0: i32) -> (i32, i32, i32) {
    %c0_i32 = arith.constant 0 : i32
    %c0_i32_0 = arith.constant 0 : i32
    %c0_i32_1 = arith.constant 0 : i32
    return %arg0, %c0_i32, %c0_i32_0 : i32, i32, i32
  }
  func.func @transform_1(%arg0: i32) -> (i32, i32) {
    %c0_i32 = arith.constant 0 : i32
    %c0_i32_0 = arith.constant 0 : i32
    %c0_i32_1 = arith.constant 0 : i32
    return %c0_i32, %c0_i32_0 : i32, i32
  }
  func.func @transform_2(%arg0: i32) -> (i32, i32) {
    %c0_i32 = arith.constant 0 : i32
    %c0_i32_0 = arith.constant 0 : i32
    %c0_i32_1 = arith.constant 0 : i32
    return %c0_i32, %c0_i32_0 : i32, i32
  }
  func.func @transform_3(%arg0: i32) -> (i32, i32) {
    %c0_i32 = arith.constant 0 : i32
    %c0_i32_0 = arith.constant 0 : i32
    %c0_i32_1 = arith.constant 0 : i32
    return %c0_i32, %c0_i32_0 : i32, i32
  }
  func.func @transform_4(%arg0: i32) -> (i32, i32) {
    %c0_i32 = arith.constant 0 : i32
    %c0_i32_0 = arith.constant 0 : i32
    %c0_i32_1 = arith.constant 0 : i32
    return %c0_i32, %c0_i32_0 : i32, i32
  }
  func.func @transform_5(%arg0: i32) -> (i32, i32) {
    %c0_i32 = arith.constant 0 : i32
    %c0_i32_0 = arith.constant 0 : i32
    %c0_i32_1 = arith.constant 0 : i32
    return %c0_i32, %c0_i32_0 : i32, i32
  }
  func.func @transform_6(%arg0: i32) -> (i32, i32) {
    %c0_i32 = arith.constant 0 : i32
    %c0_i32_0 = arith.constant 0 : i32
    %c0_i32_1 = arith.constant 0 : i32
    return %c0_i32, %c0_i32_0 : i32, i32
  }
  func.func @transform_7(%arg0: i32) -> (i32, i32, i32) {
    %c0_i32 = arith.constant 0 : i32
    %c0_i32_0 = arith.constant 0 : i32
    %c0_i32_1 = arith.constant 0 : i32
    return %arg0, %c0_i32, %c0_i32_0 : i32, i32, i32
  }
}

</mosaic_0001>

<bundles_post_ra>
// kernel: causal_vgg_block_forward.1
= control target key start
LH: loop header
LB: loop body
LE: loop exit
PB: predicated region body
PF: predicated region fallthrough
CT: control target
= control target key end

     0   :  { %s2243_s24 = smov 0   ;;  %s3043_s0 = inlined_call_operand.vmem [shape: bf16[2,4,832], index: 0, kind: input, shape index: {}]   ;;  %s3044_s1 = inlined_call_operand.vmem [shape: bf16[8,36], index: 1, kind: input, shape index: {}]   ;;  %s3045_s2 = inlined_call_operand.vmem [shape: f32[8,1], index: 2, kind: input, shape index: {}]   ;;  %s3046_s3 = inlined_call_operand.vmem [shape: bf16[8,72], index: 3, kind: input, shape index: {}]   ;;  %s3047_s4 = inlined_call_operand.vmem [shape: f32[8,1], index: 4, kind: input, shape index: {}]   ;;  %s3048_s5 = inlined_call_operand.vmem [shape: f32[1,704], index: 5, kind: input, shape index: {}]   ;;  %s3049_s6 = inlined_call_operand.vmem [shape: f32[685,128], index: 6, kind: input, shape index: {}]   ;;  %s3050_s7 = inlined_call_operand.vmem [shape: f32[2,8,128], index: 7, kind: output, shape index: {}]  }
   0x1 LB: > { %s1840_s25 = sadd.s32 4294967295, %s2186_s24   ;;  %p1844_p0 = scmp.ge.s32.totalorder %s2186_s24, 1  ;;  %s2186_s24 = sphi %s2243_s24, %s17_s24  }
   0x2   : > { %p237_p1 = scmp.lt.s32.totalorder %s2186_s24, 3 }
   0x4   : > { %p238_p2 = pnand %p1844_p0, %p237_p1 }
   0x5   : > { %p268_p3 = scmp.lt.s32.totalorder (!%p238_p2), %s1840_s25, 1  ;;  %v287_v0 = vlaneseq (!%p238_p2)  ;;  %v2188_v1 = vmov (!%p238_p2), 1983009808   ;;  %s2189_s30 = smov (!%p238_p2), 38   ;;  %vm325_vm0 = vcmask (!%p238_p2), 1043456   ;;  %vm338_vm1 = vcmask (!%p238_p2), 1041408  }
   0x6   : > { %241 = sbr.rel (%p238_p2) target bundleno = 1212 (0x4bc), region = 48  ;;  %v285_v2 = vunpack.c.l.s4 (!%p238_p2), %v2188_v1  ;;  %s2190_s8 = smov (!%p238_p2), 37   ;;  %vm339_vm2 = vcmask (!%p238_p2), 521220   ;;  %v2197_v26 = vmov (!%p238_p2), 0   ;;  %v565_v27 = vld [vmem:[%s3045_s2] sm:$0xff] (!%p238_p2)  ;;  %vm371_vm4 = vcmask (!%p238_p2), 302080  }
   0x7   : > { %v2253_v3 = vshrl.u32 (!%p238_p2), %v287_v0, 7  ;;  %s2191_s9 = smov (!%p238_p2), 36   ;;  %s2192_s10 = smov (!%p238_p2), 20   ;;  %vm2293_vm3 = vmor (!%p238_p2), %vm339_vm2, %vm338_vm1  ;;  %278 = vst [vmem:[#allocation2] sm:$0xf] (!%p238_p2), %v2197_v26  ;;  %700 = vmatprep.mubr.bf16.mxu0 (!%p238_p2), %v2197_v26  ;;  %741 = vmatprep.mubr.bf16.mxu1 (!%p238_p2), %v2197_v26  ;;  %vm399_vm5 = vcmask (!%p238_p2), 293888  }
   0x8   : > { %v286_v4 = vunpack.c.0.s8 (!%p238_p2), %v285_v2  ;;  %s2193_s11 = smov (!%p238_p2), 19   ;;  %s2194_s12 = smov (!%p238_p2), 18   ;;  %2109 = vset.pattern.permute.xlu0 (!%p238_p2), %v2197_v26  ;;  %vm327_vm6 = vcmask (!%p238_p2), 310272   ;;  %vm424_vm7 = vcmask (!%p238_p2), 162816   ;;  %vm449_vm8 = vcmask (!%p238_p2), 154624  }
   0x9   : > { %s2195_s13 = smov (!%p238_p2), 2   ;;  %s2196_s14 = smov (!%p238_p2), 1   ;;  %vm474_vm9 = vcmask (!%p238_p2), 146432   ;;  %vm499_vm10 = vcmask (!%p238_p2), 15360   ;;  %vm524_vm11 = vcmask (!%p238_p2), 7168   ;;  %vm382_vm12 = vcmask (!%p238_p2), 1043458  }
   0xa   : > { %v289_v5 = vsub.s32 (!%p238_p2), %v286_v4, %v2253_v3  ;;  %vm383_vm13 = vcmask (!%p238_p2), 523270   ;;  %vm856_vm15 = vcmask (!%p238_p2), 523268   ;;  %vm1241_vm2 = vcmask (!%p238_p2), 588800  }
   0xb   : > { %vm2392_vm14 = vmor (!%p238_p2), %vm383_vm13, %vm382_vm12 }
   0xd   : > { %s3058_s25 = smov (!%p268_p3, %s1840_s25), 1 }
   0xe   : > { %s2085_s26 = smul.u32 14, %s3058_s25 }
  0x10   : > { %s272_s29 = scalar_lea.vmem %s3043_s0, %s2085_s26 }
  0x11   : > { %v280_v6 = vld [vmem:[%s272_s29 + $0x8] sm:$0x3f]  ;;  %v279_v7 = vld [vmem:[%s272_s29] sm:$0xff]  ;;  %s2198_s29 = smov 127  }
  0x12   : > { %v2260_v8 = vrot.slane %v280_v6, %v289_v5  ;;  %v290_v9 = vrot.slane %v279_v7, %v289_v5  ;;  %v342_v10 = vcombine.low %v279_v7, %v279_v7  ;;  %v283_v11 = vcombine.high %v279_v7, %v279_v7 }
  0x13   : > { %v350_v13 = vcombine.low %v280_v6, %v280_v6  ;;  %v298_v19 = vcombine.high %v280_v6, %v280_v6 }
  0x14   : > { %317 = vrot.lane.b32.xlu1 %v2260_v8, %s2189_s30  ;;  %313 = vrot.lane.b32.xlu0 %v290_v9, %s2189_s30  ;;  %v349_v12 = vrot.slane %v342_v10, %v289_v5  ;;  %v297_v14 = vrot.slane %v283_v11, %v289_v5  ;;  %v536_v15 = vrot.slane %v290_v9, 4  ;;  %v538_v22 = vrot.slane %v2260_v8, 4 }
  0x15   : > { %v357_v17 = vrot.slane %v350_v13, %v289_v5  ;;  %v312_v20 = vrot.slane %v298_v19, %v289_v5 }
  0x16   : > { %v537_v16 = vrot.slane %v297_v14, 4 }
  0x17   : > { %v539_v21 = vrot.slane %v312_v20, 4 }
  0x18   : > { %358 = vrot.lane.b32.xlu1 %v349_v12, %s2190_s8  ;;  %360 = vrot.lane.b32.xlu0 %v290_v9, %s2190_s8  ;;  %v540_v18 = vsel %vm325_vm0, %v536_v15, %v537_v16  ;;  %v541_v24 = vsel %vm325_vm0, %v537_v16, %v538_v22 }
  0x19   : > { %546 = vst [vmem:[#allocation3 + $0x60] sm:$0x33] %v540_v18  ;;  %v542_v23 = vsel %vm325_vm0, %v538_v22, %v539_v21  ;;  %547 = vst [vmem:[#allocation3 + $0x68] sm:$0x33] %v541_v24 }
  0x1a   : > { %548 = vst.msk [vmem:[#allocation3 + $0x70] sm:$0x33] %vm2293_vm3, %v542_v23 }
  0x1c   : > { %362 = vrot.lane.b32.xlu1 %v357_v17, %s2190_s8  ;;  %386 = vrot.lane.b32.xlu0 %v290_v9, %s2191_s9 }
  0x20   : > { %388 = vrot.lane.b32.xlu1 %v297_v14, %s2191_s9  ;;  %315 = vrot.lane.b32.xlu0 %v297_v14, %s2189_s30 }
  0x24   : > { %411 = vrot.lane.b32.xlu1 %v349_v12, %s2192_s10  ;;  %390 = vrot.lane.b32.xlu0 %v2260_v8, %s2191_s9 }
  0x28   : > { %415 = vrot.lane.b32.xlu1 %v357_v17, %s2192_s10  ;;  %413 = vrot.lane.b32.xlu0 %v290_v9, %s2192_s10 }
  0x2c   : > { %438 = vrot.lane.b32.xlu1 %v297_v14, %s2193_s11  ;;  %436 = vrot.lane.b32.xlu0 %v290_v9, %s2193_s11 }
  0x30   : > { %461 = vrot.lane.b32.xlu1 %v349_v12, %s2194_s12  ;;  %440 = vrot.lane.b32.xlu0 %v2260_v8, %s2193_s11 }
  0x34   : > { %465 = vrot.lane.b32.xlu1 %v357_v17, %s2194_s12  ;;  %463 = vrot.lane.b32.xlu0 %v290_v9, %s2194_s12 }
  0x38   : > { %488 = vrot.lane.b32.xlu1 %v297_v14, %s2195_s13  ;;  %486 = vrot.lane.b32.xlu0 %v290_v9, %s2195_s13 }
  0x3c   : > { %511 = vrot.lane.b32.xlu1 %v349_v12, %s2196_s14  ;;  %490 = vrot.lane.b32.xlu0 %v2260_v8, %s2195_s13 }
  0x40   : > { %515 = vrot.lane.b32.xlu1 %v357_v17, %s2196_s14  ;;  %513 = vrot.lane.b32.xlu0 %v290_v9, %s2196_s14 }
  0x44   : > { %364 = vrot.lane.b32.xlu1 %v2260_v8, %s2190_s8  ;;  %319 = vrot.lane.b32.xlu0 %v312_v20, %s2189_s30 }
  0x48   : > { %417 = vrot.lane.b32.xlu1 %v2260_v8, %s2192_s10  ;;  %392 = vrot.lane.b32.xlu0 %v312_v20, %s2191_s9 }
  0x4c   : > { %467 = vrot.lane.b32.xlu1 %v2260_v8, %s2194_s12  ;;  %442 = vrot.lane.b32.xlu0 %v312_v20, %s2193_s11 }
  0x50   : > { %517 = vrot.lane.b32.xlu1 %v2260_v8, %s2196_s14  ;;  %492 = vrot.lane.b32.xlu0 %v312_v20, %s2195_s13 }
  0x54   : > { %568 = vperm.xlu0 %2109, %v565_v27  }
  0x86   : > { %v2320_v28 = vpop.permute.xlu1 %317  ;;  %v314_v29 = vpop.permute.xlu0 %313 }
  0x87   : > { %v323_v40 = vrot.slane %v2320_v28, 4  ;;  %v321_v44 = vrot.slane %v314_v29, 4 }
  0x8a   : > { %v359_v30 = vpop.permute.xlu1 %358  ;;  %v361_v31 = vpop.permute.xlu0 %360 }
  0x8b   : > { %v366_v32 = vrot.slane %v359_v30, 4  ;;  %v367_v33 = vrot.slane %v361_v31, 4 }
  0x8d   : > { %v370_v34 = vsel %vm325_vm0, %v366_v32, %v367_v33 }
  0x8e   : > { %v372_v35 = vsel %vm371_vm4, %v359_v30, %v370_v34  ;;  %v2324_v36 = vpop.permute.xlu1 %362  ;;  %v387_v37 = vpop.permute.xlu0 %386 }
  0x8f   : > { %380 = vst [vmem:[#allocation3] sm:$0xcc] %v372_v35  ;;  %v368_v38 = vrot.slane %v2324_v36, 4  ;;  %v394_v45 = vrot.slane %v387_v37, 4 }
  0x91   : > { %v373_v39 = vsel %vm325_vm0, %v367_v33, %v368_v38 }
  0x92   : > { %v374_v41 = vsel %vm371_vm4, %v361_v31, %v373_v39  ;;  %v389_v42 = vpop.permute.xlu1 %388  ;;  %v316_v43 = vpop.permute.xlu0 %315 }
  0x93   : > { %381 = vst [vmem:[#allocation3 + $0x8] sm:$0xcc] %v374_v41  ;;  %v395_v46 = vrot.slane %v389_v42, 4  ;;  %v322_v47 = vrot.slane %v316_v43, 4 }
  0x95   : > { %v398_v48 = vsel %vm325_vm0, %v394_v45, %v395_v46  ;;  %v326_v49 = vsel %vm325_vm0, %v321_v44, %v322_v47  ;;  %v329_v50 = vsel %vm325_vm0, %v322_v47, %v323_v40 }
  0x96   : > { %v400_v51 = vsel %vm399_vm5, %v387_v37, %v398_v48  ;;  %v328_v52 = vsel %vm327_vm6, %v314_v29, %v326_v49  ;;  %v330_v53 = vsel %vm327_vm6, %v316_v43, %v329_v50  ;;  %v412_v54 = vpop.permute.xlu1 %411  ;;  %v2340_v55 = vpop.permute.xlu0 %390 }
  0x97   : > { %408 = vst [vmem:[#allocation3 + $0x18] sm:$0x33] %v400_v51  ;;  %336 = vst [vmem:[#allocation3] sm:$0x33] %v328_v52  ;;  %v396_v56 = vrot.slane %v2340_v55, 4  ;;  %v419_v57 = vrot.slane %v412_v54, 4 }
  0x98   : > { %337 = vst [vmem:[#allocation3 + $0x8] sm:$0x33] %v330_v53 }
  0x99   : > { %v401_v58 = vsel %vm325_vm0, %v395_v46, %v396_v56 }
  0x9a   : > { %v402_v59 = vsel %vm399_vm5, %v389_v42, %v401_v58  ;;  %v2347_v60 = vpop.permute.xlu1 %415  ;;  %v414_v61 = vpop.permute.xlu0 %413 }
  0x9b   : > { %409 = vst [vmem:[#allocation3 + $0x20] sm:$0x33] %v402_v59  ;;  %v421_v62 = vrot.slane %v2347_v60, 4  ;;  %v420_v63 = vrot.slane %v414_v61, 4 }
  0x9d   : > { %v423_v0 = vsel %vm325_vm0, %v419_v57, %v420_v63  ;;  %v426_v1 = vsel %vm325_vm0, %v420_v63, %v421_v62 }
  0x9e   : > { %v425_v2 = vsel %vm424_vm7, %v412_v54, %v423_v0  ;;  %v427_v4 = vsel %vm424_vm7, %v414_v61, %v426_v1  ;;  %v439_v5 = vpop.permute.xlu1 %438  ;;  %v437_v6 = vpop.permute.xlu0 %436 }
  0x9f   : > { %433 = vst [vmem:[#allocation3 + $0x18] sm:$0xcc] %v425_v2  ;;  %434 = vst [vmem:[#allocation3 + $0x20] sm:$0xcc] %v427_v4  ;;  %v445_v7 = vrot.slane %v439_v5, 4  ;;  %v444_v8 = vrot.slane %v437_v6, 4 }
  0xa1   : > { %v448_v9 = vsel %vm325_vm0, %v444_v8, %v445_v7  ;;  %v563_v8 = vld [vmem:[#allocation3 + $0x68] sm:$0x33] }
  0xa2   : > { %v450_v10 = vsel %vm449_vm8, %v437_v6, %v448_v9  ;;  %v462_v11 = vpop.permute.xlu1 %461  ;;  %v2358_v12 = vpop.permute.xlu0 %440 }
  0xa3   : > { %458 = vst [vmem:[#allocation3 + $0x30] sm:$0x33] %v450_v10  ;;  %v446_v13 = vrot.slane %v2358_v12, 4  ;;  %v469_v14 = vrot.slane %v462_v11, 4 }
  0xa5   : > { %v451_v15 = vsel %vm325_vm0, %v445_v7, %v446_v13  ;;  %v562_v7 = vld [vmem:[#allocation3 + $0x60] sm:$0x33] }
  0xa6   : > { %v452_v16 = vsel %vm449_vm8, %v439_v5, %v451_v15  ;;  %v2365_v17 = vpop.permute.xlu1 %465  ;;  %v464_v18 = vpop.permute.xlu0 %463  ;;  %v2144_v19 = vld [vmem:[#allocation3 + $0x4] ss:$24 sps:$4 sm:$0xff]   ;;  %v2148_v23 = vld [vmem:[#allocation3] ss:$24 sps:$4 sm:$0xff]  }
  0xa7   : > { %459 = vst [vmem:[#allocation3 + $0x38] sm:$0x33] %v452_v16  ;;  %v471_v20 = vrot.slane %v2365_v17, 4  ;;  %v470_v21 = vrot.slane %v464_v18, 4  ;;  %v2146_v22 = vld [vmem:[#allocation3 + $0xc] ss:$24 sps:$4 sm:$0xff]   ;;  %668 = vmatprep.subr.bf16.mxu0 %v2144_v19 }
  0xa8   : > { %v2149_v24 = vld [vmem:[#allocation3 + $0x8] ss:$24 sps:$4 sm:$0xff]   ;;  %709 = vmatprep.subr.bf16.mxu1 %v2146_v22  ;;  %669 = vmatpush1.bf16.msra.mxu0 %v2148_v23 }
  0xa9   : > { %v473_v27 = vsel %vm325_vm0, %v469_v14, %v470_v21  ;;  %v476_v29 = vsel %vm325_vm0, %v470_v21, %v471_v20  ;;  %710 = vmatpush1.bf16.msra.mxu1 %v2149_v24  ;;  %v1862_v14 = vcombine.high %v563_v8, %v563_v8  ;;  %v1861_v24 = vcombine.low %v563_v8, %v563_v8 }
  0xaa   : > { %v475_v30 = vsel %vm474_vm9, %v462_v11, %v473_v27  ;;  %v477_v31 = vsel %vm474_vm9, %v464_v18, %v476_v29  ;;  %v489_v32 = vpop.permute.xlu1 %488  ;;  %v487_v33 = vpop.permute.xlu0 %486  ;;  %v1860_v11 = vcombine.high %v562_v7, %v562_v7 }
  0xab   : > { %483 = vst [vmem:[#allocation3 + $0x30] sm:$0xcc] %v475_v30  ;;  %484 = vst [vmem:[#allocation3 + $0x38] sm:$0xcc] %v477_v31  ;;  %v495_v34 = vrot.slane %v489_v32, 4  ;;  %v494_v35 = vrot.slane %v487_v33, 4 }
  0xad   : > { %v498_v37 = vsel %vm325_vm0, %v494_v35, %v495_v34 }
  0xae   : > { %v500_v39 = vsel %vm499_vm10, %v487_v33, %v498_v37  ;;  %v512_v41 = vpop.permute.xlu1 %511  ;;  %v2376_v42 = vpop.permute.xlu0 %490 }
  0xaf   : > { %508 = vst [vmem:[#allocation3 + $0x48] sm:$0x33] %v500_v39  ;;  %v496_v43 = vrot.slane %v2376_v42, 4  ;;  %v519_v44 = vrot.slane %v512_v41, 4 }
  0xb1   : > { %v501_v45 = vsel %vm325_vm0, %v495_v34, %v496_v43 }
  0xb2   : > { %v502_v46 = vsel %vm499_vm10, %v489_v32, %v501_v45  ;;  %v2383_v47 = vpop.permute.xlu1 %515  ;;  %v514_v48 = vpop.permute.xlu0 %513  ;;  %v557_v10 = vld [vmem:[#allocation3 + $0x38] sm:$0xff] }
  0xb3   : > { %509 = vst [vmem:[#allocation3 + $0x50] sm:$0x33] %v502_v46  ;;  %v521_v49 = vrot.slane %v2383_v47, 4  ;;  %v520_v50 = vrot.slane %v514_v48, 4 }
  0xb5   : > { %v523_v51 = vsel %vm325_vm0, %v519_v44, %v520_v50  ;;  %v526_v52 = vsel %vm325_vm0, %v520_v50, %v521_v49 }
  0xb6   : > { %v525_v53 = vsel %vm524_vm11, %v512_v41, %v523_v51  ;;  %v527_v54 = vsel %vm524_vm11, %v514_v48, %v526_v52  ;;  %v365_v57 = vpop.permute.xlu1 %364  ;;  %v320_v58 = vpop.permute.xlu0 %319  ;;  %v549_v41 = vld [vmem:[%s3044_s1] sm:$0xf]  ;;  %v795_v51 = vsub.s32 0, %v2253_v3 }
  0xb7   : > { %533 = vst [vmem:[#allocation3 + $0x48] sm:$0xcc] %v525_v53  ;;  %534 = vst [vmem:[#allocation3 + $0x50] sm:$0xcc] %v527_v54  ;;  %v369_v59 = vrot.slane %v365_v57, 4  ;;  %v324_v61 = vrot.slane %v320_v58, 4 }
  0xb8   : > { %v791_v52 = vld [vmem:[%s3048_s5] sm:$0x3f]  ;;  %v803_v53 = vsub.s32 2, %v2253_v3  ;;  %v799_v54 = vsub.s32 1, %v2253_v3  ;;  %v807_v57 = vsub.s32 3, %v2253_v3 }
  0xb9   : > { %v375_v0 = vsel %vm325_vm0, %v368_v38, %v369_v59  ;;  %v331_v1 = vsel %vm325_vm0, %v323_v40, %v324_v61  ;;  %v796_v59 = vrot.slane %v791_v52, %v795_v51 }
  0xba   : > { %v376_v2 = vsel %vm371_vm4, %v2324_v36, %v375_v0  ;;  %v332_v4 = vsel %vm327_vm6, %v2320_v28, %v331_v1  ;;  %v418_v5 = vpop.permute.xlu1 %417  ;;  %v393_v6 = vpop.permute.xlu0 %392  ;;  %v556_v36 = vld [vmem:[#allocation3 + $0x30] sm:$0xff]  ;;  %v804_v63 = vrot.slane %v791_v52, %v803_v53  ;;  %v800_v0 = vrot.slane %v791_v52, %v799_v54 }
  0xbb   : > { %385 = vst.msk [vmem:[#allocation3 + $0x10] sm:$0xcc] %vm2392_vm14, %v376_v2  ;;  %v422_v38 = vrot.slane %v418_v5, 4  ;;  %v397_v9 = vrot.slane %v393_v6, 4  ;;  %v808_v5 = vrot.slane %v791_v52, %v807_v57 }
  0xbc   : > { %341 = vst.msk [vmem:[#allocation3 + $0x10] sm:$0x33] %vm2293_vm3, %v332_v4 }
  0xbd   : > { %v428_v40 = vsel %vm325_vm0, %v421_v62, %v422_v38  ;;  %v403_v28 = vsel %vm325_vm0, %v396_v56, %v397_v9  ;;  %v1859_v62 = vcombine.low %v562_v7, %v562_v7 }
  0xbe   : > { %v429_v15 = vsel %vm424_vm7, %v2347_v60, %v428_v40  ;;  %v404_v16 = vsel %vm399_vm5, %v2340_v55, %v403_v28  ;;  %v468_v18 = vpop.permute.xlu1 %467  ;;  %v443_v19 = vpop.permute.xlu0 %442  ;;  %v559_v21 = vld [vmem:[#allocation3 + $0x48] sm:$0xff]  ;;  %v560_v23 = vld [vmem:[#allocation3 + $0x50] sm:$0xff] }
  0xbf   : > { %v2150_v22 = vld [vmem:[#allocation3 + $0x34] ss:$24 sps:$4 sm:$0xff]   ;;  %435 = vst.msk [vmem:[#allocation3 + $0x28] sm:$0xcc] %vm2392_vm14, %v429_v15  ;;  %v472_v56 = vrot.slane %v468_v18, 4  ;;  %v447_v27 = vrot.slane %v443_v19, 4  ;;  %v1853_v60 = vcombine.low %v556_v36, %v559_v21  ;;  %v1855_v30 = vcombine.low %v557_v10, %v560_v23 }
  0xc0   : > { %410 = vst.msk [vmem:[#allocation3 + $0x28] sm:$0x33] %vm2293_vm3, %v404_v16  ;;  %v2152_v29 = vld [vmem:[#allocation3 + $0x3c] ss:$24 sps:$4 sm:$0xff]   ;;  %670 = vmatprep.subr.bf16.mxu0 %v2150_v22  ;;  %v651_v37 = vsel %vm338_vm1, %v1859_v62, 0  ;;  %v811_v19 = vsub.s32 4, %v2253_v3 }
  0xc1   : > { %v478_v55 = vsel %vm325_vm0, %v471_v20, %v472_v56  ;;  %v453_v31 = vsel %vm325_vm0, %v446_v13, %v447_v27  ;;  %711 = vmatprep.subr.bf16.mxu1 %v2152_v29  ;;  %671 = vmatpush1.bf16.msra.mxu0 %v1853_v60  ;;  %v815_v21 = vsub.s32 5, %v2253_v3 }
  0xc2   : > { %v479_v32 = vsel %vm474_vm9, %v2365_v17, %v478_v55  ;;  %v454_v33 = vsel %vm449_vm8, %v2358_v12, %v453_v31  ;;  %v518_v34 = vpop.permute.xlu1 %517  ;;  %712 = vmatpush1.bf16.msra.mxu1 %v1855_v30  ;;  %v493_v35 = vpop.permute.xlu0 %492  ;;  %1865 = vmatprep.subr.msk.bf16.mxu0 %vm338_vm1, %v1860_v11  ;;  %v657_v17 = vsel %vm338_vm1, %v1861_v24, 0  ;;  %v812_v22 = vrot.slane %v791_v52, %v811_v19 }
  0xc3   : > { %485 = vst.msk [vmem:[#allocation3 + $0x40] sm:$0xcc] %vm2392_vm14, %v479_v32  ;;  %v522_v13 = vrot.slane %v518_v34, 4  ;;  %v497_v20 = vrot.slane %v493_v35, 4  ;;  %1867 = vmatprep.subr.msk.bf16.mxu1 %vm338_vm1, %v1862_v14  ;;  %v816_v56 = vrot.slane %v791_v52, %v815_v21  ;;  %v1498_v35 = vld [vmem:[%s3049_s6 + $0x80] sm:$0xff] }
  0xc4   : > { %460 = vst.msk [vmem:[#allocation3 + $0x40] sm:$0x33] %vm2293_vm3, %v454_v33 }
  0xc5   : > { %v528_v12 = vsel %vm325_vm0, %v521_v49, %v522_v13  ;;  %v503_v39 = vsel %vm325_vm0, %v496_v43, %v497_v20  ;;  %673 = vmatpush1.bf16.msra.mxu0 %v651_v37 }
  0xc6   : > { %v529_v44 = vsel %vm524_vm11, %v2383_v47, %v528_v12  ;;  %v504_v45 = vsel %vm499_vm10, %v2376_v42, %v503_v39  ;;  %714 = vmatpush1.bf16.msra.mxu1 %v657_v17  ;;  %v564_v42 = vld [vmem:[#allocation3 + $0x70] sm:$0x33] }
  0xc7   : > { %v2158_v46 = vld [vmem:[#allocation3 + $0x14] ss:$24 sps:$4 sm:$0xff]   ;;  %v2160_v48 = vld [vmem:[#allocation3 + $0x10] ss:$24 sps:$4 sm:$0xff]   ;;  %535 = vst.msk [vmem:[#allocation3 + $0x58] sm:$0xcc] %vm2392_vm14, %v529_v44  ;;  %v1864_v49 = vcombine.high %v564_v42, %v564_v42  ;;  %v1863_v50 = vcombine.low %v564_v42, %v564_v42 }
  0xc8   : > { %510 = vst.msk [vmem:[#allocation3 + $0x58] sm:$0x33] %vm2293_vm3, %v504_v45  ;;  %1866 = vmatmul.mubr.msk.bf16.vlgmr.msra.gmra.mrb[0].mxu0 %vm399_vm5, %v549_v41  ;;  %750 = vmatprep.subr.bf16.mxu0 %v2158_v46  ;;  %v1100_v44 = vld [vmem:[%s3047_s4] sm:$0xff]  ;;  %vm1434_vm3 = vcmask 900096  }
  0xc9   : > { %1868 = vmatmul.mubr.msk.bf16.vlgmr.msra.gmra.mrb[0].mxu1 %vm399_vm5, %v549_v41  ;;  %751 = vmatpush1.bf16.msra.mxu0 %v2160_v48  ;;  %v663_v25 = vsel %vm338_vm1, %v1863_v50, 0 }
  0xca   : > { %782 = vmatprep.mubr.bf16.mxu0 %v2197_v26  ;;  %1295 = vmatprep.mubr.bf16.mxu1 %v2197_v26 }
  0xcf   : > { %v2161_v43 = vld [vmem:[#allocation3 + $0x44] ss:$24 sps:$4 sm:$0xff]   ;;  %v2163_v47 = vld [vmem:[#allocation3 + $0x40] ss:$24 sps:$4 sm:$0xff]  }
  0xd0   : > { %752 = vmatprep.subr.bf16.mxu0 %v2161_v43 }
  0xd1   : > { %753 = vmatpush1.bf16.msra.mxu0 %v2163_v47 }
  0xd2   : > { %1869 = vmatprep.subr.msk.bf16.mxu0 %vm338_vm1, %v1864_v49  ;;  %vm2483_vm1 = vmor %vm856_vm15, %vm325_vm0 }
  0xd3   : > { %v569_v58 = vpop.permute.xlu0 %568 }
  0xd5   : > { %755 = vmatpush1.bf16.msra.mxu0 %v663_v25 }
  0xd8   : > { %1870 = vmatmul.mubr.msk.bf16.vlgmr.msra.gmra.mrb[4].mxu0 %vm399_vm5, %v549_v41 }
 0x19b   : > { %v702_v61 = vpop.f32.mrb[0].mxu0 }
 0x19c   : > { %v703_v1 = vadd.f32 %v702_v61, %v569_v58  ;;  %v743_v2 = vpop.f32.mrb[0].mxu1  ;;  %v704_v4 = vpop.f32.mrb[1].mxu0 }
 0x19d   : > { %v744_v6 = vadd.f32 %v743_v2, %v569_v58  ;;  %v705_v7 = vadd.f32 %v704_v4, %v569_v58  ;;  %v745_v8 = vpop.f32.mrb[1].mxu1  ;;  %v706_v38 = vpop.f32.mrb[2].mxu0 }
 0x19e   : > { %v823_v9 = vmul.f32 %v796_v59, %v703_v1  ;;  %v746_v40 = vadd.f32 %v745_v8, %v569_v58  ;;  %v707_v28 = vpop.f32.mrb[3].mxu0  ;;  %v747_v36 = vpop.f32.mrb[2].mxu1 }
 0x19f   : > { %v825_v10 = vmul.f32 %v804_v63, %v744_v6  ;;  %v824_v11 = vmul.f32 %v800_v0, %v705_v7  ;;  %v748_v14 = vpop.f32.mrb[3].mxu1 }
 0x1a0   : > { %v826_v15 = vmul.f32 %v808_v5, %v746_v40 }
 0x1a1   : > { %v1914_v16 = vpack.c.bf16 %v824_v11, %v823_v9 }
 0x1a2   : > { %v1915_v18 = vpack.c.bf16 %v826_v15, %v825_v10 }
 0x1a3   : > { %853 = vst [vmem:[#allocation2 + $0x4] sm:$0xff] %v1914_v16 }
 0x1a4   : > { %854 = vst [vmem:[#allocation2 + $0xc] sm:$0xff] %v1915_v18 }
 0x1aa   : > { %v859_v23 = vld [vmem:[#allocation2] sm:$0xff] }
 0x1ab   : > { %v784_v62 = vpop.f32.mrb[4].mxu0  ;;  %891 = vrot.lane.b32.xlu0 %v859_v23, %s2190_s8  ;;  %v1059_v24 = vrot.slane %v859_v23, 4  ;;  %867 = vrot.lane.b32.xlu1 %v859_v23, %s2189_s30  ;;  %v860_v27 = vld [vmem:[#allocation2 + $0x8] sm:$0xff] }
 0x1ac   : > { %v785_v29 = vadd.f32 %v784_v62, %v569_v58  ;;  %v786_v60 = vpop.f32.mrb[5].mxu0  ;;  %v1060_v30 = vrot.slane %v860_v27, 4 }
 0x1ad   : > { %v787_v55 = vadd.f32 %v786_v60, %v569_v58  ;;  %v788_v31 = vpop.f32.mrb[6].mxu0 }
 0x1ae   : > { %v827_v32 = vmul.f32 %v812_v22, %v785_v29  ;;  %v789_v33 = vpop.f32.mrb[7].mxu0  ;;  %v2478_v3 = vsel %vm325_vm0, %v1059_v24, %v1060_v30 }
 0x1af   : > { %v828_v34 = vmul.f32 %v816_v56, %v787_v55  ;;  %915 = vrot.lane.b32.xlu0 %v859_v23, %s2191_s9  ;;  %869 = vrot.lane.b32.xlu1 %v860_v27, %s2189_s30 }
 0x1b1   : > { %v1916_v37 = vpack.c.bf16 %v828_v34, %v827_v32 }
 0x1b3   : > { %858 = vst.msk [vmem:[#allocation2 + $0x14] sm:$0xff] %vm2483_vm1, %v1916_v37  ;;  %939 = vrot.lane.b32.xlu0 %v859_v23, %s2192_s10  ;;  %893 = vrot.lane.b32.xlu1 %v860_v27, %s2190_s8 }
 0x1b7   : > { %963 = vrot.lane.b32.xlu0 %v859_v23, %s2193_s11  ;;  %917 = vrot.lane.b32.xlu1 %v860_v27, %s2191_s9 }
 0x1ba   : > { %v861_v13 = vld [vmem:[#allocation2 + $0x10] sm:$0xff]  ;;  %v862_v20 = vld [vmem:[#allocation2 + $0x18] sm:$0xf] }
 0x1bb   : > { %987 = vrot.lane.b32.xlu0 %v859_v23, %s2194_s12  ;;  %941 = vrot.lane.b32.xlu1 %v860_v27, %s2192_s10  ;;  %v1061_v17 = vrot.slane %v861_v13, 4  ;;  %v1062_v12 = vrot.slane %v862_v20, 4 }
 0x1bd   : > { %v2496_v39 = vsel %vm325_vm0, %v1060_v30, %v1061_v17  ;;  %v1065_v41 = vsel %vm325_vm0, %v1061_v17, %v1062_v12 }
 0x1be   : > { %1071 = vst.msk [vmem:[#allocation3 + $0xd0] sm:$0xff] %vm2483_vm1, %v1065_v41 }
 0x1bf   : > { %1011 = vrot.lane.b32.xlu0 %v859_v23, %s2195_s13  ;;  %965 = vrot.lane.b32.xlu1 %v860_v27, %s2193_s11 }
 0x1c3   : > { %1035 = vrot.lane.b32.xlu0 %v859_v23, %s2196_s14  ;;  %989 = vrot.lane.b32.xlu1 %v860_v27, %s2194_s12 }
 0x1c7   : > { %871 = vrot.lane.b32.xlu0 %v861_v13, %s2189_s30  ;;  %1013 = vrot.lane.b32.xlu1 %v860_v27, %s2195_s13 }
 0x1cb   : > { %919 = vrot.lane.b32.xlu0 %v861_v13, %s2191_s9  ;;  %1037 = vrot.lane.b32.xlu1 %v860_v27, %s2196_s14 }
 0x1cf   : > { %967 = vrot.lane.b32.xlu0 %v861_v13, %s2193_s11  ;;  %895 = vrot.lane.b32.xlu1 %v861_v13, %s2190_s8 }
 0x1d3   : > { %1015 = vrot.lane.b32.xlu0 %v861_v13, %s2195_s13  ;;  %943 = vrot.lane.b32.xlu1 %v861_v13, %s2192_s10 }
 0x1d7   : > { %873 = vrot.lane.b32.xlu0 %v862_v20, %s2189_s30  ;;  %991 = vrot.lane.b32.xlu1 %v861_v13, %s2194_s12 }
 0x1db   : > { %921 = vrot.lane.b32.xlu0 %v862_v20, %s2191_s9  ;;  %1039 = vrot.lane.b32.xlu1 %v861_v13, %s2196_s14 }
 0x1df   : > { %969 = vrot.lane.b32.xlu0 %v862_v20, %s2193_s11  ;;  %897 = vrot.lane.b32.xlu1 %v862_v20, %s2190_s8  ;;  %s2199_s11 = smov 110  }
 0x1e3   : > { %1017 = vrot.lane.b32.xlu0 %v862_v20, %s2195_s13  ;;  %945 = vrot.lane.b32.xlu1 %v862_v20, %s2192_s10 }
 0x1e7   : > { %1103 = vperm.xlu0 %2109, %v1100_v44   ;;  %993 = vrot.lane.b32.xlu1 %v862_v20, %s2194_s12  ;;  %s2200_s12 = smov 109  }
 0x1eb   : > { %1041 = vrot.lane.b32.xlu1 %v862_v20, %s2196_s14 }
 0x21d   : > { %v892_v45 = vpop.permute.xlu0 %891  ;;  %v868_v46 = vpop.permute.xlu1 %867 }
 0x21e   : > { %v875_v43 = vrot.slane %v868_v46, 4  ;;  %v899_v52 = vrot.slane %v892_v45, 4 }
 0x221   : > { %v916_v48 = vpop.permute.xlu0 %915  ;;  %v870_v42 = vpop.permute.xlu1 %869 }
 0x222   : > { %v876_v47 = vrot.slane %v870_v42, 4  ;;  %v923_v61 = vrot.slane %v916_v48, 4 }
 0x224   : > { %v879_v49 = vsel %vm325_vm0, %v875_v43, %v876_v47 }
 0x225   : > { %v880_v50 = vsel %vm327_vm6, %v868_v46, %v879_v49  ;;  %v940_v25 = vpop.permute.xlu0 %939  ;;  %v2528_v51 = vpop.permute.xlu1 %893 }
 0x226   : > { %888 = vst [vmem:[#allocation3] sm:$0xff] %v880_v50  ;;  %v900_v53 = vrot.slane %v2528_v51, 4  ;;  %v947_v7 = vrot.slane %v940_v25, 4 }
 0x228   : > { %v903_v54 = vsel %vm325_vm0, %v899_v52, %v900_v53 }
 0x229   : > { %v904_v57 = vsel %vm371_vm4, %v892_v45, %v903_v54  ;;  %v964_v58 = vpop.permute.xlu0 %963  ;;  %v918_v59 = vpop.permute.xlu1 %917  ;;  %v1899_v54 = vcombine.high %v2478_v3, %v2478_v3 }
 0x22a   : > { %912 = vst [vmem:[#allocation3 + $0x18] sm:$0xff] %v904_v57  ;;  %v924_v63 = vrot.slane %v918_v59, 4  ;;  %v1874_v0 = vcombine.low %v880_v50, %v904_v57  ;;  %v1875_v1 = vcombine.high %v880_v50, %v904_v57  ;;  %v971_v36 = vrot.slane %v964_v58, 4 }
 0x22b   : > { %v1898_v57 = vcombine.low %v2478_v3, %v2478_v3 }
 0x22c   : > { %v927_v2 = vsel %vm325_vm0, %v923_v61, %v924_v63  ;;  %1263 = vmatprep.subr.bf16.mxu1 %v1875_v1 }
 0x22d   : > { %v928_v4 = vsel %vm399_vm5, %v916_v48, %v927_v2  ;;  %v988_v5 = vpop.permute.xlu0 %987  ;;  %v2537_v6 = vpop.permute.xlu1 %941  ;;  %1264 = vmatpush1.bf16.msra.mxu1 %v1874_v0 }
 0x22e   : > { %936 = vst [vmem:[#allocation3 + $0x30] sm:$0xff] %v928_v4  ;;  %v948_v8 = vrot.slane %v2537_v6, 4  ;;  %v995_v21 = vrot.slane %v988_v5, 4 }
 0x230   : > { %v951_v38 = vsel %vm325_vm0, %v947_v7, %v948_v8 }
 0x231   : > { %v952_v9 = vsel %vm424_vm7, %v940_v25, %v951_v38  ;;  %v1012_v40 = vpop.permute.xlu0 %1011  ;;  %v966_v28 = vpop.permute.xlu1 %965 }
 0x232   : > { %960 = vst [vmem:[#allocation3 + $0x48] sm:$0xff] %v952_v9  ;;  %v972_v10 = vrot.slane %v966_v28, 4  ;;  %v1880_v11 = vcombine.low %v928_v4, %v952_v9  ;;  %v1881_v14 = vcombine.high %v928_v4, %v952_v9  ;;  %v1019_v62 = vrot.slane %v1012_v40, 4  ;;  %v2611_v9 = vld [vmem:[%s3046_s3] sm:$0xf] }
 0x234   : > { %v975_v15 = vsel %vm325_vm0, %v971_v36, %v972_v10  ;;  %1265 = vmatprep.subr.bf16.mxu1 %v1881_v14 }
 0x235   : > { %v976_v16 = vsel %vm449_vm8, %v964_v58, %v975_v15  ;;  %v1036_v18 = vpop.permute.xlu0 %1035  ;;  %v2546_v19 = vpop.permute.xlu1 %989  ;;  %1266 = vmatpush1.bf16.msra.mxu1 %v1880_v11 }
 0x236   : > { %984 = vst [vmem:[#allocation3 + $0x60] sm:$0xff] %v976_v16  ;;  %v996_v22 = vrot.slane %v2546_v19, 4  ;;  %v1043_v20 = vrot.slane %v1036_v18, 4 }
 0x238   : > { %v999_v23 = vsel %vm325_vm0, %v995_v21, %v996_v22 }
 0x239   : > { %v1000_v24 = vsel %vm474_vm9, %v988_v5, %v999_v23  ;;  %v2553_v56 = vpop.permute.xlu0 %871  ;;  %v1014_v27 = vpop.permute.xlu1 %1013 }
 0x23a   : > { %v877_v29 = vrot.slane %v2553_v56, 4  ;;  %v1020_v60 = vrot.slane %v1014_v27, 4  ;;  %v1886_v30 = vcombine.low %v976_v16, %v1000_v24  ;;  %v1887_v55 = vcombine.high %v976_v16, %v1000_v24 }
 0x23c   : > { %v881_v31 = vsel %vm325_vm0, %v876_v47, %v877_v29  ;;  %v1023_v32 = vsel %vm325_vm0, %v1019_v62, %v1020_v60  ;;  %1267 = vmatprep.subr.bf16.mxu1 %v1887_v55 }
 0x23d   : > { %v882_v33 = vsel %vm327_vm6, %v870_v42, %v881_v31  ;;  %v1024_v34 = vsel %vm499_vm10, %v1012_v40, %v1023_v32  ;;  %v2560_v37 = vpop.permute.xlu0 %919  ;;  %v2562_v13 = vpop.permute.xlu1 %1037  ;;  %1268 = vmatpush1.bf16.msra.mxu1 %v1886_v30 }
 0x23e   : > { %889 = vst [vmem:[#allocation3 + $0x8] sm:$0xff] %v882_v33  ;;  %v925_v17 = vrot.slane %v2560_v37, 4  ;;  %v1044_v12 = vrot.slane %v2562_v13, 4 }
 0x240   : > { %v929_v41 = vsel %vm325_vm0, %v924_v63, %v925_v17  ;;  %v1047_v44 = vsel %vm325_vm0, %v1043_v20, %v1044_v12 }
 0x241   : > { %v930_v45 = vsel %vm399_vm5, %v918_v59, %v929_v41  ;;  %v1048_v46 = vsel %vm524_vm11, %v1036_v18, %v1047_v44  ;;  %v2570_v48 = vpop.permute.xlu0 %967  ;;  %v2572_v42 = vpop.permute.xlu1 %895 }
 0x242   : > { %937 = vst [vmem:[#allocation3 + $0x38] sm:$0xff] %v930_v45  ;;  %v973_v43 = vrot.slane %v2570_v48, 4  ;;  %v901_v47 = vrot.slane %v2572_v42, 4  ;;  %v1892_v49 = vcombine.low %v1024_v34, %v1048_v46  ;;  %v1893_v50 = vcombine.high %v1024_v34, %v1048_v46 }
 0x243   : > { %v1901_v46 = vcombine.high %v2496_v39, %v2496_v39 }
 0x244   : > { %v977_v25 = vsel %vm325_vm0, %v972_v10, %v973_v43  ;;  %v905_v52 = vsel %vm325_vm0, %v900_v53, %v901_v47  ;;  %1269 = vmatprep.subr.bf16.mxu1 %v1893_v50 }
 0x245   : > { %v978_v58 = vsel %vm449_vm8, %v966_v28, %v977_v25  ;;  %v906_v59 = vsel %vm371_vm4, %v2528_v51, %v905_v52  ;;  %v2591_v61 = vpop.permute.xlu0 %1015  ;;  %v2593_v63 = vpop.permute.xlu1 %943  ;;  %1270 = vmatpush1.bf16.msra.mxu1 %v1892_v49  ;;  %v1246_v51 = vsel %vm325_vm0, %v1898_v57, 0 }
 0x246   : > { %985 = vst [vmem:[#allocation3 + $0x68] sm:$0xff] %v978_v58  ;;  %913 = vst [vmem:[#allocation3 + $0x20] sm:$0xff] %v906_v59  ;;  %v1021_v53 = vrot.slane %v2591_v61, 4  ;;  %v949_v0 = vrot.slane %v2593_v63, 4  ;;  %1904 = vmatprep.subr.msk.bf16.mxu1 %vm325_vm0, %v1899_v54  ;;  %v1877_v2 = vcombine.high %v882_v33, %v906_v59  ;;  %v1876_v28 = vcombine.low %v882_v33, %v906_v59 }
 0x248   : > { %v1025_v3 = vsel %vm325_vm0, %v1020_v60, %v1021_v53  ;;  %v953_v1 = vsel %vm325_vm0, %v948_v8, %v949_v0 }
 0x249   : > { %v1026_v4 = vsel %vm499_vm10, %v1014_v27, %v1025_v3  ;;  %v954_v5 = vsel %vm424_vm7, %v2537_v6, %v953_v1  ;;  %v874_v7 = vpop.permute.xlu0 %873  ;;  %v2606_v38 = vpop.permute.xlu1 %991  ;;  %1272 = vmatpush1.bf16.msra.mxu1 %v1246_v51  ;;  %v1099_v51 = vld [vmem:[#allocation3 + $0xd0] sm:$0xff] }
 0x24a   : > { %961 = vst [vmem:[#allocation3 + $0x50] sm:$0xff] %v954_v5  ;;  %v878_v8 = vrot.slane %v874_v7, 4  ;;  %v997_v40 = vrot.slane %v2606_v38, 4  ;;  %1304 = vmatprep.subr.bf16.mxu1 %v1877_v2  ;;  %v1883_v10 = vcombine.high %v930_v45, %v954_v5  ;;  %v1499_v7 = vld [vmem:[%s3049_s6 + $0x88] sm:$0xff] }
 0x24c   : > { %v883_v36 = vsel %vm325_vm0, %v877_v29, %v878_v8  ;;  %v1001_v6 = vsel %vm325_vm0, %v996_v22, %v997_v40  ;;  %1905 = vmatmul.mubr.msk.bf16.vlgmr.msra.gmra.mrb[4].mxu1 %vm1241_vm2, %v2611_v9  ;;  %v1882_v22 = vcombine.low %v930_v45, %v954_v5  ;;  %v1902_v5 = vcombine.low %v1099_v51, %v1099_v51  ;;  %v1482_v8 = vld [vmem:[%s3049_s6] sm:$0xff] }
 0x24d   : > { %v884_v11 = vsel %vm327_vm6, %v2553_v56, %v883_v36  ;;  %v1002_v14 = vsel %vm474_vm9, %v2546_v19, %v1001_v6  ;;  %v922_v15 = vpop.permute.xlu0 %921  ;;  %v1040_v16 = vpop.permute.xlu1 %1039  ;;  %1305 = vmatpush1.bf16.msra.mxu1 %v1876_v28  ;;  %1336 = vmatprep.mubr.bf16.mxu1 %v2197_v26  ;;  %v1501_v36 = vld [vmem:[%s3049_s6 + $0x98] sm:$0xff]  ;;  %vm1572_vm6 = vcmask 1044480  }
 0x24e   : > { %890 = vst.msk [vmem:[#allocation3 + $0x10] sm:$0xff] %vm2483_vm1, %v884_v11  ;;  %v926_v18 = vrot.slane %v922_v15, 4  ;;  %v1045_v21 = vrot.slane %v1040_v16, 4  ;;  %1306 = vmatprep.subr.bf16.mxu1 %v1883_v10  ;;  %v1889_v24 = vcombine.high %v978_v58, %v1002_v14  ;;  %v1888_v55 = vcombine.low %v978_v58, %v1002_v14  ;;  %v1484_v10 = vld [vmem:[%s3049_s6 + $0x10] sm:$0xff]  ;;  %v1485_v11 = vld [vmem:[%s3049_s6 + $0x18] sm:$0xff]  ;;  %v1502_v14 = vld [vmem:[%s3049_s6 + $0xa0] sm:$0xff] }
 0x24f   : > { %v1993_v15 = vpack.c.bf16 %v1485_v11, %v1484_v10  ;;  %v1496_v10 = vld [vmem:[%s3049_s6 + $0x70] sm:$0xff]  ;;  %v1497_v11 = vld [vmem:[%s3049_s6 + $0x78] sm:$0xff] }
 0x250   : > { %v931_v23 = vsel %vm325_vm0, %v925_v17, %v926_v18  ;;  %v1049_v62 = vsel %vm325_vm0, %v1044_v12, %v1045_v21  ;;  %v1486_v18 = vld [vmem:[%s3049_s6 + $0x20] sm:$0xff] }
 0x251   : > { %v932_v19 = vsel %vm399_vm5, %v2560_v37, %v931_v23  ;;  %v1050_v56 = vsel %vm524_vm11, %v2562_v13, %v1049_v62  ;;  %v970_v27 = vpop.permute.xlu0 %969  ;;  %v898_v29 = vpop.permute.xlu1 %897  ;;  %1307 = vmatpush1.bf16.msra.mxu1 %v1882_v22  ;;  %v1504_v23 = vld [vmem:[%s3049_s6 + $0xb0] sm:$0xff]  ;;  %v1505_v62 = vld [vmem:[%s3049_s6 + $0xb8] sm:$0xff]  ;;  %vm1568_vm5 = vcmask 367616  }
 0x252   : > { %938 = vst.msk [vmem:[#allocation3 + $0x40] sm:$0xff] %vm2483_vm1, %v932_v19  ;;  %v974_v60 = vrot.slane %v970_v27, 4  ;;  %v902_v30 = vrot.slane %v898_v29, 4  ;;  %1308 = vmatprep.subr.bf16.mxu1 %v1889_v24  ;;  %v1895_v33 = vcombine.high %v1026_v4, %v1050_v56  ;;  %v1894_v41 = vcombine.low %v1026_v4, %v1050_v56  ;;  %v1488_v27 = vld [vmem:[%s3049_s6 + $0x30] sm:$0xff]  ;;  %v1489_v29 = vld [vmem:[%s3049_s6 + $0x38] sm:$0xff] }
 0x253   : > { %v1903_v4 = vcombine.high %v1099_v51, %v1099_v51  ;;  %v1534_v51 = vld [vmem:[%s3049_s6 + $0x1a0] sm:$0xff] }
 0x254   : > { %v979_v31 = vsel %vm325_vm0, %v973_v43, %v974_v60  ;;  %v907_v32 = vsel %vm325_vm0, %v901_v47, %v902_v30 }
 0x255   : > { %v980_v34 = vsel %vm449_vm8, %v2570_v48, %v979_v31  ;;  %v908_v37 = vsel %vm371_vm4, %v2572_v42, %v907_v32  ;;  %v1018_v13 = vpop.permute.xlu0 %1017  ;;  %v946_v20 = vpop.permute.xlu1 %945  ;;  %1309 = vmatpush1.bf16.msra.mxu1 %v1888_v55  ;;  %v1900_v48 = vcombine.low %v2496_v39, %v2496_v39  ;;  %v1999_v55 = vpack.c.bf16 %v1505_v62, %v1504_v23  ;;  %v1506_v31 = vld [vmem:[%s3049_s6 + $0xc0] sm:$0xff]  ;;  %v1507_v32 = vld [vmem:[%s3049_s6 + $0xc8] sm:$0xff] }
 0x256   : > { %986 = vst.msk [vmem:[#allocation3 + $0x70] sm:$0xff] %vm2483_vm1, %v980_v34  ;;  %914 = vst.msk [vmem:[#allocation3 + $0x28] sm:$0xff] %vm2483_vm1, %v908_v37  ;;  %v1022_v17 = vrot.slane %v1018_v13, 4  ;;  %v950_v12 = vrot.slane %v946_v20, 4  ;;  %1310 = vmatprep.subr.bf16.mxu1 %v1895_v33  ;;  %v1530_v33 = vld [vmem:[%s3049_s6 + $0x180] sm:$0xff]  ;;  %v1531_v37 = vld [vmem:[%s3049_s6 + $0x188] sm:$0xff] }
 0x257   : > { %v1252_v39 = vsel %vm325_vm0, %v1900_v48, 0  ;;  %v1514_v13 = vld [vmem:[%s3049_s6 + $0x100] sm:$0xff]  ;;  %v1515_v20 = vld [vmem:[%s3049_s6 + $0x108] sm:$0xff]  ;;  %vm1464_vm4 = vcmask 891904  }
 0x258   : > { %v1027_v44 = vsel %vm325_vm0, %v1021_v53, %v1022_v17  ;;  %v955_v45 = vsel %vm325_vm0, %v949_v0, %v950_v12  ;;  %v2019_v12 = vpack.c.bf16 %v1531_v37, %v1530_v33  ;;  %v1491_v48 = vld [vmem:[%s3049_s6 + $0x48] sm:$0xff]  ;;  %v1541_v37 = vld [vmem:[%s3049_s6 + $0x1d8] sm:$0xff] }
 0x259   : > { %v1028_v42 = vsel %vm499_vm10, %v2591_v61, %v1027_v44  ;;  %v956_v43 = vsel %vm424_vm7, %v2593_v63, %v955_v45  ;;  %v994_v47 = vpop.permute.xlu1 %993  ;;  %1311 = vmatpush1.bf16.msra.mxu1 %v1894_v41  ;;  %v2021_v41 = vpack.c.bf16 %v1515_v20, %v1514_v13  ;;  %v2001_v44 = vpack.c.bf16 %v1489_v29, %v1488_v27  ;;  %v1538_v27 = vld [vmem:[%s3049_s6 + $0x1c0] sm:$0xff]  ;;  %v1539_v29 = vld [vmem:[%s3049_s6 + $0x1c8] sm:$0xff]  ;;  %v1524_v20 = vld [vmem:[%s3049_s6 + $0x150] sm:$0xff] }
 0x25a   : > { %1034 = vst.msk [vmem:[#allocation3 + $0xa0] sm:$0xff] %vm2483_vm1, %v1028_v42  ;;  %962 = vst.msk [vmem:[#allocation3 + $0x58] sm:$0xff] %vm2483_vm1, %v956_v43  ;;  %v998_v49 = vrot.slane %v994_v47, 4  ;;  %1906 = vmatprep.subr.msk.bf16.mxu1 %vm325_vm0, %v1901_v46  ;;  %v2003_v45 = vpack.c.bf16 %v1507_v32, %v1506_v31  ;;  %v1490_v46 = vld [vmem:[%s3049_s6 + $0x40] sm:$0xff]  ;;  %v1508_v43 = vld [vmem:[%s3049_s6 + $0xd0] sm:$0xff]  ;;  %vm2202_vm7 = vmmov 1  }
 0x25b   : > { %v2005_v42 = vpack.c.bf16 %v1491_v48, %v1490_v46  ;;  %v1509_v47 = vld [vmem:[%s3049_s6 + $0xd8] sm:$0xff]  ;;  %v1522_v31 = vld [vmem:[%s3049_s6 + $0x140] sm:$0xff]  ;;  %v1523_v32 = vld [vmem:[%s3049_s6 + $0x148] sm:$0xff] }
 0x25c   : > { %v1003_v50 = vsel %vm325_vm0, %v997_v40, %v998_v49  ;;  %v1483_v40 = vld [vmem:[%s3049_s6 + $0x8] sm:$0xff]  ;;  %v2007_v49 = vpack.c.bf16 %v1509_v47, %v1508_v43  ;;  %v2037_v33 = vpack.c.bf16 %v1523_v32, %v1522_v31  ;;  %v1526_v46 = vld [vmem:[%s3049_s6 + $0x160] sm:$0xff]  ;;  %v1544_v43 = vld [vmem:[%s3049_s6 + $0x1f0] sm:$0xff] }
 0x25d   : > { %v1004_v25 = vsel %vm474_vm9, %v2606_v38, %v1003_v50  ;;  %v1042_v52 = vpop.permute.xlu1 %1041  ;;  %1313 = vmatpush1.bf16.msra.mxu1 %v1252_v39  ;;  %v2168_v54 = vld [vmem:[#allocation3 + $0x14] ss:$24 sps:$4 sm:$0xff]   ;;  %v2166_v58 = vld [vmem:[#allocation3 + $0x10] ss:$24 sps:$4 sm:$0xff]   ;;  %v1987_v38 = vpack.c.bf16 %v1499_v7, %v1498_v35  ;;  %v1989_v28 = vpack.c.bf16 %v1483_v40, %v1482_v8  ;;  %v1493_v39 = vld [vmem:[%s3049_s6 + $0x58] sm:$0xff] }
 0x25e   : > { %1010 = vst.msk [vmem:[#allocation3 + $0x88] sm:$0xff] %vm2483_vm1, %v1004_v25  ;;  %v1046_v57 = vrot.slane %v1042_v52, 4  ;;  %1345 = vmatprep.subr.bf16.mxu1 %v2168_v54  ;;  %v1492_v50 = vld [vmem:[%s3049_s6 + $0x50] sm:$0xff]  ;;  %v1533_v54 = vld [vmem:[%s3049_s6 + $0x198] sm:$0xff]  ;;  %v1527_v48 = vld [vmem:[%s3049_s6 + $0x168] sm:$0xff] }
 0x25f   : > { %1988 = vmatprep.subr.bf16.mxu0 %v1987_v38  ;;  %v1532_v25 = vld [vmem:[%s3049_s6 + $0x190] sm:$0xff]  ;;  %v2009_v52 = vpack.c.bf16 %v1493_v39, %v1492_v50  ;;  %v1513_v40 = vld [vmem:[%s3049_s6 + $0xf8] sm:$0xff]  ;;  %vm2083_vm8 = vmpackc.low %vm1572_vm6, %vm2202_vm7 }
 0x260   : > { %v1051_v59 = vsel %vm325_vm0, %v1045_v21, %v1046_v57  ;;  %1907 = vmatmul.mubr.msk.bf16.vlgmr.msra.gmra.mrb[8].mxu1 %vm1241_vm2, %v2611_v9  ;;  %1990 = vmatpush3.bf16.msra.mxu0 %v1989_v28  ;;  %v1487_v21 = vld [vmem:[%s3049_s6 + $0x28] sm:$0xff]  ;;  %v1516_v57 = vld [vmem:[%s3049_s6 + $0x110] sm:$0xff]  ;;  %v1545_v47 = vld [vmem:[%s3049_s6 + $0x1f8] sm:$0xff] }
 0x261   : > { %v1052_v61 = vsel %vm524_vm11, %v1040_v16, %v1051_v59  ;;  %1346 = vmatpush1.bf16.msra.mxu1 %v2166_v58  ;;  %v2171_v63 = vld [vmem:[#allocation3 + $0x44] ss:$24 sps:$4 sm:$0xff]   ;;  %1377 = vmatprep.mubr.bf16.mxu1 %v2197_v26  ;;  %v2169_v53 = vld [vmem:[#allocation3 + $0x40] ss:$24 sps:$4 sm:$0xff]   ;;  %v1258_v26 = vsel %vm325_vm0, %v1902_v5, 0  ;;  %v1503_v16 = vld [vmem:[%s3049_s6 + $0xa8] sm:$0xff]  ;;  %v1997_v56 = vpack.c.bf16 %v1487_v21, %v1486_v18  ;;  %v2023_v59 = vpack.c.bf16 %v1533_v54, %v1532_v25 }
 0x262   : > { %1058 = vst.msk [vmem:[#allocation3 + $0xb8] sm:$0xff] %vm2483_vm1, %v1052_v61  ;;  %1347 = vmatprep.subr.bf16.mxu1 %v2171_v63  ;;  %v1995_v22 = vpack.c.bf16 %v1503_v16, %v1502_v14  ;;  %v1517_v58 = vld [vmem:[%s3049_s6 + $0x118] sm:$0xff]  ;;  %v1510_v63 = vld [vmem:[%s3049_s6 + $0xe0] sm:$0xff]  ;;  %v1512_v8 = vld [vmem:[%s3049_s6 + $0xf0] sm:$0xff]  ;;  %v2017_v16 = vpack.c.bf16 %v1497_v11, %v1496_v10 }
 0x263   : > { %v2025_v61 = vpack.c.bf16 %v1517_v58, %v1516_v57  ;;  %v1518_v5 = vld [vmem:[%s3049_s6 + $0x120] sm:$0xff]  ;;  %v1536_v14 = vld [vmem:[%s3049_s6 + $0x1b0] sm:$0xff]  ;;  %v1537_v18 = vld [vmem:[%s3049_s6 + $0x1b8] sm:$0xff] }
 0x264   : > { %v1520_v21 = vld [vmem:[%s3049_s6 + $0x130] sm:$0xff]  ;;  %v1529_v39 = vld [vmem:[%s3049_s6 + $0x178] sm:$0xff]  ;;  %v1546_v11 = vld [vmem:[%s3049_s6 + $0x200] sm:$0xff] }
 0x265   : > { %1348 = vmatpush1.bf16.msra.mxu1 %v2169_v53  ;;  %v2174_v0 = vld [vmem:[#allocation3 + $0x74] ss:$24 sps:$4 sm:$0xff]   ;;  %v2172_v3 = vld [vmem:[#allocation3 + $0x70] ss:$24 sps:$4 sm:$0xff]  }
 0x266   : > { %1349 = vmatprep.subr.bf16.mxu1 %v2174_v0  ;;  %v2723_v24 = vpop.permute.xlu0 %1103  ;;  %v1511_v53 = vld [vmem:[%s3049_s6 + $0xe8] sm:$0xff]  ;;  %v1528_v50 = vld [vmem:[%s3049_s6 + $0x170] sm:$0xff] }
 0x267   : > { %v2011_v0 = vpack.c.bf16 %v1511_v53, %v1510_v63  ;;  %v2049_v25 = vpack.c.bf16 %v1529_v39, %v1528_v50  ;;  %v1555_v39 = vld [vmem:[%s3049_s6 + $0x248] sm:$0xff] }
 0x269   : > { %1350 = vmatpush1.bf16.msra.mxu1 %v2172_v3  ;;  %v2177_v1 = vld [vmem:[#allocation3 + $0xa4] ss:$24 sps:$4 sm:$0xff]   ;;  %v2175_v2 = vld [vmem:[#allocation3 + $0xa0] ss:$24 sps:$4 sm:$0xff]  }
 0x26a   : > { %1351 = vmatprep.subr.bf16.mxu1 %v2177_v1  ;;  %v1494_v3 = vld [vmem:[%s3049_s6 + $0x60] sm:$0xff]  ;;  %v1495_v1 = vld [vmem:[%s3049_s6 + $0x68] sm:$0xff] }
 0x26d   : > { %1352 = vmatpush1.bf16.msra.mxu1 %v2175_v2  ;;  %v2013_v2 = vpack.c.bf16 %v1495_v1, %v1494_v3 }
 0x26e   : > { %1908 = vmatprep.subr.msk.bf16.mxu1 %vm325_vm0, %v1903_v4  ;;  %v1535_v4 = vld [vmem:[%s3049_s6 + $0x1a8] sm:$0xff]  ;;  %vm1404_vm0 = vcmask 1039360  }
 0x26f   : > { %v2027_v35 = vpack.c.bf16 %v1535_v4, %v1534_v51 }
 0x271   : > { %1354 = vmatpush1.bf16.msra.mxu1 %v1258_v26  ;;  %v1519_v26 = vld [vmem:[%s3049_s6 + $0x128] sm:$0xff] }
 0x272   : > { %2020 = vmatprep.subr.bf16.mxu1 %v2019_v12  ;;  %v2029_v7 = vpack.c.bf16 %v1519_v26, %v1518_v5 }
 0x274   : > { %1909 = vmatmul.mubr.msk.bf16.vlgmr.msra.gmra.mrb[12].mxu1 %vm1241_vm2, %v2611_v9  ;;  %v1500_v9 = vld [vmem:[%s3049_s6 + $0x90] sm:$0xff] }
 0x275   : > { %v1991_v6 = vpack.c.bf16 %v1501_v36, %v1500_v9  ;;  %2022 = vmatpush3.bf16.msra.mxu1 %v2021_v41  ;;  %v1542_v41 = vld [vmem:[%s3049_s6 + $0x1e0] sm:$0xff] }
 0x276   : > { %2024 = vmatprep.subr.bf16.mxu1 %v2023_v59 }
 0x277   : > { %1992 = vmatprep.subr.bf16.mxu0 %v1991_v6  ;;  %v2015_v6 = vpack.c.bf16 %v1513_v40, %v1512_v8 }
 0x278   : > { %1994 = vmatpush3.bf16.msra.mxu0 %v1993_v15 }
 0x279   : > { %1996 = vmatprep.subr.bf16.mxu0 %v1995_v22  ;;  %2026 = vmatpush3.bf16.msra.mxu1 %v2025_v61  ;;  %v1521_v22 = vld [vmem:[%s3049_s6 + $0x138] sm:$0xff] }
 0x27a   : > { %2028 = vmatprep.subr.bf16.mxu1 %v2027_v35 }
 0x27c   : > { %1998 = vmatpush3.bf16.msra.mxu0 %v1997_v56  ;;  %v2033_v56 = vpack.c.bf16 %v1521_v22, %v1520_v21 }
 0x27d   : > { %2000 = vmatprep.subr.bf16.mxu0 %v1999_v55  ;;  %2030 = vmatpush3.bf16.msra.mxu1 %v2029_v7  ;;  %v2035_v55 = vpack.c.bf16 %v1539_v29, %v1538_v27  ;;  %v1550_v27 = vld [vmem:[%s3049_s6 + $0x220] sm:$0xff]  ;;  %v1551_v29 = vld [vmem:[%s3049_s6 + $0x228] sm:$0xff] }
 0x27e   : > { %v2058_v32 = vpack.c.bf16 %v1551_v29, %v1550_v27 }
 0x280   : > { %2002 = vmatpush3.bf16.msra.mxu0 %v2001_v44  ;;  %v1543_v44 = vld [vmem:[%s3049_s6 + $0x1e8] sm:$0xff] }
 0x281   : > { %2004 = vmatprep.subr.bf16.mxu0 %v2003_v45  ;;  %v2043_v45 = vpack.c.bf16 %v1543_v44, %v1542_v41 }
 0x284   : > { %2006 = vmatpush3.bf16.msra.mxu0 %v2005_v42  ;;  %v2045_v42 = vpack.c.bf16 %v1527_v48, %v1526_v46 }
 0x285   : > { %2008 = vmatprep.subr.bf16.mxu0 %v2007_v49  ;;  %v2047_v49 = vpack.c.bf16 %v1545_v47, %v1544_v43 }
 0x288   : > { %2010 = vmatpush3.bf16.msra.mxu0 %v2009_v52 }
 0x289   : > { %2012 = vmatprep.subr.bf16.mxu0 %v2011_v0 }
 0x28c   : > { %2014 = vmatpush3.bf16.msra.mxu0 %v2013_v2 }
 0x28d   : > { %2016 = vmatprep.subr.bf16.mxu0 %v2015_v6 }
 0x290   : > { %2018 = vmatpush3.bf16.msra.mxu0 %v2017_v16 }
 0x31f   : > { %v1297_v19 = vpop.f32.mrb[4].mxu1 }
 0x320   : > { %v2732_v60 = vadd.f32 %v1297_v19, %v2723_v24  ;;  %v2734_v30 = vpop.f32.mrb[5].mxu1  ;;  %v2031_v19 = vpack.c.bf16 %v1537_v18, %v1536_v14  ;;  %v1547_v14 = vld [vmem:[%s3049_s6 + $0x208] sm:$0xff] }
 0x321   : > { %v1301_v34 = vpop.f32.mrb[6].mxu1  ;;  %v2822_v9 = vadd.f32 %v2734_v30, %v2723_v24  ;;  %v2201_v30 = vmov 0.0|0.0  }
 0x322   : > { %v1302_v17 = vpop.f32.mrb[7].mxu1  ;;  %1392 = vrot.lane.b32.xlu0 %v2732_v60, %s2198_s29  ;;  %2032 = vmatprep.subr.bf16.mxu1 %v2031_v19  ;;  %v1540_v34 = vld [vmem:[%s3049_s6 + $0x1d0] sm:$0xff]  ;;  %v1549_v19 = vld [vmem:[%s3049_s6 + $0x218] sm:$0xff] }
 0x323   : > { %2034 = vmatpush3.bf16.msra.mxu1 %v2033_v56  ;;  %2051 = vmatprep.subr.bf16.mxu0 %v2201_v30  ;;  %v2039_v13 = vpack.c.bf16 %v1541_v37, %v1540_v34  ;;  %v1525_v17 = vld [vmem:[%s3049_s6 + $0x158] sm:$0xff] }
 0x324   : > { %2036 = vmatprep.subr.bf16.mxu1 %v2035_v55  ;;  %v2041_v12 = vpack.c.bf16 %v1525_v17, %v1524_v20  ;;  %v1552_v20 = vld [vmem:[%s3049_s6 + $0x230] sm:$0xff]  ;;  %v1553_v17 = vld [vmem:[%s3049_s6 + $0x238] sm:$0xff] }
 0x326   : > { %1422 = vrot.lane.b32.xlu0 %v2732_v60, %s2199_s11 }
 0x327   : > { %2038 = vmatpush3.bf16.msra.mxu1 %v2037_v33 }
 0x328   : > { %2040 = vmatprep.subr.bf16.mxu1 %v2039_v13 }
 0x32a   : > { %1452 = vrot.lane.b32.xlu0 %v2732_v60, %s2200_s12 }
 0x32b   : > { %2042 = vmatpush3.bf16.msra.mxu1 %v2041_v12 }
 0x32c   : > { %2044 = vmatprep.subr.bf16.mxu1 %v2043_v45 }
 0x32f   : > { %2046 = vmatpush3.bf16.msra.mxu1 %v2045_v42  ;;  %v2061_v42 = vpack.c.bf16 %v1553_v17, %v1552_v20 }
 0x330   : > { %2048 = vmatprep.subr.bf16.mxu1 %v2047_v49 }
 0x333   : > { %v1338_v38 = vpop.f32.mrb[8].mxu1  ;;  %2050 = vmatpush3.bf16.msra.mxu1 %v2049_v25 }
 0x334   : > { %v2825_v28 = vadd.f32 %v1338_v38, %v2723_v24  ;;  %v1340_v36 = vpop.f32.mrb[9].mxu1 }
 0x335   : > { %v1342_v15 = vpop.f32.mrb[10].mxu1  ;;  %v2900_v54 = vadd.f32 %v1340_v36, %v2723_v24 }
 0x336   : > { %v1343_v23 = vpop.f32.mrb[11].mxu1  ;;  %v2110_v62 = vpack.i.bf16 %v2825_v28, %v2822_v9 }
 0x337   : > { %v2052_v23 = vpack.c.bf16 %v1547_v14, %v1546_v11  ;;  %v1565_v11 = vld [vmem:[%s3049_s6 + $0x298] sm:$0xff] }
 0x338   : > { %2111 = vrot.lane.b32.xlu1 %v2110_v62, %s2198_s29 }
 0x33c   : > { %2116 = vrot.lane.b32.xlu1 %v2110_v62, %s2199_s11 }
 0x340   : > { %2121 = vrot.lane.b32.xlu1 %v2110_v62, %s2200_s12  ;;  %v1548_v62 = vld [vmem:[%s3049_s6 + $0x210] sm:$0xff] }
 0x341   : > { %v2055_v56 = vpack.c.bf16 %v1549_v19, %v1548_v62 }
 0x347   : > { %v1379_v52 = vpop.f32.mrb[12].mxu1 }
 0x348   : > { %v2903_v57 = vadd.f32 %v1379_v52, %v2723_v24  ;;  %v1381_v58 = vpop.f32.mrb[13].mxu1 }
 0x349   : > { %v1383_v59 = vpop.f32.mrb[14].mxu1  ;;  %v2910_v53 = vadd.f32 %v1381_v58, %v2723_v24 }
 0x34a   : > { %v2125_v61 = vpack.i.bf16 %v2903_v57, %v2900_v54  ;;  %v1384_v63 = vpop.f32.mrb[15].mxu1 }
 0x34c   : > { %2126 = vrot.lane.b32.xlu1 %v2125_v61, %s2198_s29  ;;  %2131 = vrot.lane.b32.xlu0 %v2125_v61, %s2199_s11 }
 0x350   : > { %2136 = vrot.lane.b32.xlu1 %v2125_v61, %s2200_s12  ;;  %1402 = vrot.lane.b32.xlu0 %v2910_v53, %s2198_s29 }
 0x354   : > { %1432 = vrot.lane.b32.xlu1 %v2910_v53, %s2199_s11  ;;  %1462 = vrot.lane.b32.xlu0 %v2910_v53, %s2200_s12  ;;  %s1846_s12 = sshll.u32 %s3058_s25, 3 }
 0x355   : > { %s276_s23 = scalar_lea.vmem %s3050_s7, %s1846_s12 }
 0x394   : > { %v1393_v0 = vpop.permute.xlu0 %1392 }
 0x398   : > { %v1423_v2 = vpop.permute.xlu0 %1422 }
 0x39c   : > { %v1453_v15 = vpop.permute.xlu0 %1452 }
 0x3aa   : > { %v2112_v3 = vpop.permute.xlu1 %2111 }
 0x3ab   : > { %v2114_v1 = vunpack.i.h.bf16 %v2112_v3  ;;  %v2113_v51 = vunpack.i.l.bf16 %v2112_v3 }
 0x3ad   : > { %v1405_v4 = vsel %vm1404_vm0, %v1393_v0, %v2113_v51  ;;  %v1406_v5 = vsel %vm1404_vm0, %v2113_v51, %v2114_v1  ;;  %v1556_v51 = vld [vmem:[%s3049_s6 + $0x250] sm:$0xff] }
 0x3ae   : > { %v2117_v24 = vpop.permute.xlu1 %2116  ;;  %v1416_v8 = vmax.f32 %v2732_v60, %v1405_v4  ;;  %v1417_v40 = vmax.f32 %v2822_v9, %v1406_v5  ;;  %v1558_v5 = vld [vmem:[%s3049_s6 + $0x260] sm:$0xff] }
 0x3af   : > { %v2119_v26 = vunpack.i.h.bf16 %v2117_v24  ;;  %v2118_v35 = vunpack.i.l.bf16 %v2117_v24 }
 0x3b1   : > { %v1435_v7 = vsel %vm1434_vm3, %v1423_v2, %v2118_v35  ;;  %v1436_v38 = vsel %vm1434_vm3, %v2118_v35, %v2119_v26  ;;  %v1557_v2 = vld [vmem:[%s3049_s6 + $0x258] sm:$0xff] }
 0x3b2   : > { %v2122_v36 = vpop.permute.xlu1 %2121  ;;  %v1446_v16 = vmax.f32 %v1416_v8, %v1435_v7  ;;  %v1447_v18 = vmax.f32 %v1417_v40, %v1436_v38  ;;  %v2067_v4 = vpack.c.bf16 %v1557_v2, %v1556_v51  ;;  %v1560_v7 = vld [vmem:[%s3049_s6 + $0x270] sm:$0xff]  ;;  %v1561_v38 = vld [vmem:[%s3049_s6 + $0x278] sm:$0xff]  ;;  %v1562_v40 = vld [vmem:[%s3049_s6 + $0x280] sm:$0xff] }
 0x3b3   : > { %v2124_v6 = vunpack.i.h.bf16 %v2122_v36  ;;  %v2123_v10 = vunpack.i.l.bf16 %v2122_v36  ;;  %v2073_v8 = vpack.c.bf16 %v1561_v38, %v1560_v7  ;;  %v1563_v36 = vld [vmem:[%s3049_s6 + $0x288] sm:$0xff] }
 0x3b5   : > { %v1465_v21 = vsel %vm1464_vm4, %v1453_v15, %v2123_v10  ;;  %v1466_v60 = vsel %vm1464_vm4, %v2123_v10, %v2124_v6  ;;  %v1564_v10 = vld [vmem:[%s3049_s6 + $0x290] sm:$0xff] }
 0x3b6   : > { %v1476_v9 = vmax.f32 %v1446_v16, %v1465_v21  ;;  %v1477_v22 = vmax.f32 %v1447_v18, %v1466_v60  ;;  %v2079_v15 = vpack.c.bf16 %v1565_v11, %v1564_v10  ;;  %v1566_v16 = vld [vmem:[%s3049_s6 + $0x2a0] sm:$0xff]  ;;  %v1567_v18 = vld [vmem:[%s3049_s6 + $0x2a8] sm:$0x1f] }
 0x3b8   : > { %1640 = vmatprep.mubr.f32.mxu0 %v1477_v22 }
 0x3b9   : > { %1641 = vmatmul.mubr.f32.vlgmr.msra.gmra.mrb[8].mxu0 %v1476_v9  ;;  %v2082_v9 = vpack.c.bf16 %v1567_v18, %v1566_v16 }
 0x3ba   : > { %2053 = vmatpush1.bf16.msra.mxu0 %v2052_v23 }
 0x3bb   : > { %2054 = vmatprep.subr.bf16.mxu0 %v2201_v30 }
 0x3be   : > { %2056 = vmatpush1.bf16.msra.mxu0 %v2055_v56  ;;  %v2946_v55 = vpop.permute.xlu1 %2126  ;;  %v2948_v31 = vpop.permute.xlu0 %2131 }
 0x3bf   : > { %v2129_v33 = vunpack.i.h.bf16 %v2946_v55  ;;  %v2128_v34 = vunpack.i.l.bf16 %v2946_v55  ;;  %v2134_v37 = vunpack.i.h.bf16 %v2948_v31  ;;  %v2133_v13 = vunpack.i.l.bf16 %v2948_v31  ;;  %2057 = vmatprep.subr.bf16.mxu0 %v2201_v30 }
 0x3c1   : > { %v1407_v12 = vsel %vm1404_vm0, %v2114_v1, %v2128_v34  ;;  %v1408_v41 = vsel %vm1404_vm0, %v2128_v34, %v2129_v33  ;;  %v1437_v43 = vsel %vm1434_vm3, %v2119_v26, %v2133_v13  ;;  %v1438_v47 = vsel %vm1434_vm3, %v2133_v13, %v2134_v37  ;;  %v1559_v26 = vld [vmem:[%s3049_s6 + $0x268] sm:$0xff] }
 0x3c2   : > { %v1418_v44 = vmax.f32 %v2825_v28, %v1407_v12  ;;  %v1419_v45 = vmax.f32 %v2900_v54, %v1408_v41  ;;  %2059 = vmatpush1.bf16.msra.mxu0 %v2058_v32  ;;  %v2967_v46 = vpop.permute.xlu1 %2136  ;;  %v1403_v48 = vpop.permute.xlu0 %1402  ;;  %v1554_v28 = vld [vmem:[%s3049_s6 + $0x240] sm:$0xff]  ;;  %v2070_v35 = vpack.c.bf16 %v1559_v26, %v1558_v5 }
 0x3c3   : > { %v2139_v49 = vunpack.i.h.bf16 %v2967_v46  ;;  %v2138_v50 = vunpack.i.l.bf16 %v2967_v46  ;;  %2060 = vmatprep.subr.bf16.mxu0 %v2201_v30  ;;  %v1421_v58 = vmax.f32 %v2910_v53, %v1403_v48  ;;  %v2064_v3 = vpack.c.bf16 %v1555_v39, %v1554_v28 }
 0x3c4   : > { %v1448_v25 = vmax.f32 %v1418_v44, %v1437_v43  ;;  %v1449_v52 = vmax.f32 %v1419_v45, %v1438_v47  ;;  %v1409_v14 = vsel %vm1404_vm0, %v2129_v33, %v1403_v48 }
 0x3c5   : > { %v1467_v54 = vsel %vm1464_vm4, %v2124_v6, %v2138_v50  ;;  %v1468_v59 = vsel %vm1464_vm4, %v2138_v50, %v2139_v49  ;;  %v2076_v6 = vpack.c.bf16 %v1563_v36, %v1562_v40  ;;  %v1420_v60 = vmax.f32 %v2903_v57, %v1409_v14 }
 0x3c6   : > { %v1478_v61 = vmax.f32 %v1448_v25, %v1467_v54  ;;  %2062 = vmatpush1.bf16.msra.mxu0 %v2061_v42  ;;  %v1433_v63 = vpop.permute.xlu1 %1432  ;;  %v1479_v0 = vmax.f32 %v1449_v52, %v1468_v59  ;;  %v1463_v24 = vpop.permute.xlu0 %1462 }
 0x3c7   : > { %v1451_v1 = vmax.f32 %v1421_v58, %v1433_v63  ;;  %2063 = vmatprep.subr.bf16.mxu0 %v2201_v30  ;;  %v1439_v21 = vsel %vm1434_vm3, %v2134_v37, %v1433_v63  ;;  %v1469_v23 = vsel %vm1464_vm4, %v2139_v49, %v1463_v24 }
 0x3c8   : > { %1710 = vmatprep.mubr.f32.mxu1 %v1479_v0  ;;  %v1450_v22 = vmax.f32 %v1420_v60, %v1439_v21 }
 0x3c9   : > { %v1481_v53 = vmax.f32 %v1451_v1, %v1463_v24  ;;  %1711 = vmatmul.mubr.f32.vlgmr.msra.gmra.mrb[16].mxu1 %v1478_v61 }
 0x3ca   : > { %2065 = vmatpush1.bf16.msra.mxu0 %v2064_v3  ;;  %v1480_v62 = vmax.f32 %v1450_v22, %v1469_v23 }
 0x3cb   : > { %1911 = vmatprep.mubr.msk.f32.mxu0 %vm1568_vm5, %v1481_v53  ;;  %2066 = vmatprep.subr.bf16.mxu0 %v2201_v30 }
 0x3ce   : > { %2068 = vmatpush1.bf16.msra.mxu0 %v2067_v4 }
 0x3cf   : > { %2069 = vmatprep.subr.bf16.mxu0 %v2201_v30 }
 0x3d2   : > { %2071 = vmatpush1.bf16.msra.mxu0 %v2070_v35 }
 0x3d3   : > { %2072 = vmatprep.subr.bf16.mxu0 %v2201_v30 }
 0x3d6   : > { %2074 = vmatpush1.bf16.msra.mxu0 %v2073_v8 }
 0x3d7   : > { %2075 = vmatprep.subr.bf16.mxu0 %v2201_v30 }
 0x3da   : > { %2077 = vmatpush1.bf16.msra.mxu0 %v2076_v6 }
 0x3db   : > { %2078 = vmatprep.subr.bf16.mxu0 %v2201_v30 }
 0x3de   : > { %2080 = vmatpush1.bf16.msra.mxu0 %v2079_v15 }
 0x3df   : > { %2081 = vmatprep.subr.bf16.mxu0 %v2201_v30 }
 0x3e2   : > { %2084 = vmatpush1.bf16.msk.msra.mxu0 %vm2083_vm8, %v2082_v9 }
 0x3e5   : > { %1781 = vmatmul.mubr.f32.vlgmr.msra.gmra.mrb[10].mxu0 %v1480_v62 }
 0x48c   : > { %v1949_v19 = vpop.f32.mrb[8].mxu0 }
 0x48d   : > { %v1950_v56 = vpop.f32.mrb[9].mxu0 }
 0x48e   : > { %v1951_v27 = vadd.f32 %v1950_v56, %v1949_v19 }
 0x49c   : > { %v1984_v29 = vpop.f32.mrb[16].mxu1 }
 0x49d   : > { %v1985_v55 = vpop.f32.mrb[17].mxu1 }
 0x49e   : > { %v1986_v31 = vadd.f32 %v1985_v55, %v1984_v29 }
 0x4a0   : > { %v1713_v57 = vadd.f32 %v1986_v31, %v1951_v27 }
 0x4b8   : > { %v1782_v30 = vpop.f32.mrb[10].mxu0 }
 0x4b9   : > { %v1783_v32 = vadd.f32 %v1782_v30, %v1713_v57  ;;  %v1784_v33 = vpop.f32.mrb[11].mxu0 }
 0x4bb   : > { %1786 = vst [vmem:[%s276_s23] sm:$0xff] %v1783_v32 }
 0x4bc PF: > { %s17_s24 = sadd.s32 1, %s2186_s24  }
 0x4bd   : > { %p14_p4 = scmp.ge.s32.totalorder %s17_s24, 4  }
 0x4bf   :  { %16 = sbr.rel (!%p14_p4) target bundleno = 1 (0x1), region = 78 }

</bundles_post_ra>
